<compile_context>
chip_gen: v5e
topology: v5e:2x2
jax: 0.10.0
libtpu: 0.0.40
codegen_flags: <defaults>
</compile_context>

<pallas_src>
import functools
import numpy as np
import jax
import jax.numpy as jnp
from jax import lax
from jax.experimental import pallas as pl
from jax.experimental.pallas import tpu as pltpu


# ----------------------------------------------------------------------------
# Config (same toy sizes as before)
# ----------------------------------------------------------------------------

CFG = dict(
    B=2, T=16, text_dim=32,
    C=8,                # cnf_dim / mel channels
    cond_dim=32,
    style_dim=16,
    beta_hidden=16,
    hsf_hidden=16,
    bands=(4, 4),
    vq_codes=32,
    levels=0,           # -> per-band net = [RevBlock(S4), RevBlock(sn(Conv1d))]
)

OUT_LANES = 128         # lane-dense output slab width (zq in [0:C], vql at lane 127)


# ----------------------------------------------------------------------------
# Deterministic parameter construction (identical draws to the previous version)
# ----------------------------------------------------------------------------

def _w(key, shape):
    fan_in = shape[0] if len(shape) == 2 else int(np.prod(shape[1:]))
    return jax.random.normal(key, shape, jnp.float32) / np.sqrt(float(fan_in))


def sinusoidal_pe(n_freq, dim):
    pos = np.arange(n_freq, dtype=np.float32)[:, None]
    div = np.exp(-np.log(10000.0) * np.arange(0, dim, 2, dtype=np.float32) / dim)
    pe = np.zeros((n_freq, dim), np.float32)
    pe[:, 0::2] = np.sin(pos * div)
    pe[:, 1::2] = np.cos(pos * div)
    return jnp.asarray(pe)


def init_params(key):
    c = CFG
    ks = iter(jax.random.split(key, 64))
    p = {}
    # TODO(synk): AcousticModel internals undefined; simplified to one Linear on [text,f0,energy]
    p['ac_w'] = _w(next(ks), (c['text_dim'] + 2, c['C']))
    p['ac_b'] = jnp.zeros((c['C'],), jnp.float32)
    # TODO(synk): BetaScheduler undefined; Linear-SiLU-Linear-Sigmoid stand-in
    p['beta_w1'] = _w(next(ks), (1, c['beta_hidden'])); p['beta_b1'] = jnp.zeros((c['beta_hidden'],))
    p['beta_w2'] = _w(next(ks), (c['beta_hidden'], 1)); p['beta_b2'] = jnp.zeros((1,))
    # cond_f0 / cond_en (exact per reference: Linear(1,cd/2)-SiLU-Linear(cd/2,cd))
    half = c['cond_dim'] // 2
    for name in ('cf0', 'cen'):
        p[f'{name}_w1'] = _w(next(ks), (1, half)); p[f'{name}_b1'] = jnp.zeros((half,))
        p[f'{name}_w2'] = _w(next(ks), (half, c['cond_dim'])); p[f'{name}_b2'] = jnp.zeros((c['cond_dim'],))
    p['sty_w'] = _w(next(ks), (c['style_dim'], c['cond_dim'])); p['sty_b'] = jnp.zeros((c['cond_dim'],))
    p['seg_w'] = _w(next(ks), (c['text_dim'], c['cond_dim'])); p['seg_b'] = jnp.zeros((c['cond_dim'],))
    # TODO(synk): FreqPosEmbed undefined; deterministic sinusoidal (n_freq=C, dim=cond_dim)
    p['freq_pe'] = sinusoidal_pe(c['C'], c['cond_dim'])
    for i, bsz in enumerate(c['bands']):
        ch = bsz + c['cond_dim']
        p[f'pe_w_{i}'] = _w(next(ks), (c['cond_dim'] * bsz, c['cond_dim']))
        p[f'pe_b_{i}'] = jnp.zeros((c['cond_dim'],))
        # TODO(synk): S4 / RevBlock undefined; residual gated 1x1 mixing with cond injection
        p[f's4_w1_{i}'] = _w(next(ks), (ch, ch)); p[f's4_b1_{i}'] = jnp.zeros((ch,))
        p[f's4_w2_{i}'] = _w(next(ks), (ch, ch)); p[f's4_b2_{i}'] = jnp.zeros((ch,))
        p[f's4_wc_{i}'] = _w(next(ks), (c['cond_dim'], ch)); p[f's4_bc_{i}'] = jnp.zeros((ch,))
        # spectral_norm(Conv1d(ch, bsz, 3, padding=1)): normalize by top singular value
        w = _w(next(ks), (bsz, ch, 3))
        sigma = float(np.linalg.svd(np.asarray(w).reshape(bsz, -1), compute_uv=False)[0])
        p[f'out_w_{i}'] = w / sigma
        p[f'out_b_{i}'] = jnp.zeros((bsz,))
    # TODO(synk): HSFLayer undefined; 2-layer Conv1d(k=3) stack stand-in
    p['hsf_w1'] = _w(next(ks), (c['hsf_hidden'], c['C'], 3)); p['hsf_b1'] = jnp.zeros((c['hsf_hidden'],))
    p['hsf_w2'] = _w(next(ks), (c['C'], c['hsf_hidden'], 3)); p['hsf_b2'] = jnp.zeros((c['C'],))
    # TODO(synk): HierVQ internals undefined; single flat codebook nearest-neighbour VQ
    p['vq_cb'] = _w(next(ks), (c['vq_codes'], c['C']))
    return p


# ----------------------------------------------------------------------------
# One-time host-side packing: fold transposes / concats / block-diag stacking /
# constant pe_slice / spectral-norm conv taps / tap-fusion into kernel-ready
# matrices.  Pure-matmul weights are pre-cast to bf16 (MXU-native on v6e/v7x).
# ----------------------------------------------------------------------------

PACKED_KEYS = ('w_txt2y', 'y_aux', 'fe_l1', 'a_fe', 'b_cp', 'a_sty', 'a_seg',
               'mean_pool', 'expand', 'beta_pack', 'w12', 'b12',
               'w_out', 'b_out', 'w_h1', 'b_h1', 'w_h2', 'b_h2',
               'cb_t', 'e_sq', 'cb_pad', 'bmask')

# only weights that are exclusively matmul operands are stored in bf16;
# everything touched by element-wise VPU/EUP math stays f32 (v5e has no bf16 VPU).
BF16_KEYS = frozenset({'w_txt2y', 'a_fe', 'a_sty', 'a_seg', 'mean_pool', 'expand',
                       'w12', 'w_out', 'w_h1', 'w_h2', 'cb_t', 'cb_pad'})


def pack_params(p):
    c = CFG
    B, T = c['B'], c['T']
    C, cd = c['C'], c['cond_dim']
    hid = c['hsf_hidden']
    bands = c['bands']
    rows = B * T
    Ch2 = sum(b + cd for b in bands)                       # 72 = both bands' channels
    half = cd // 2
    gate_off = ((Ch2 + 127) // 128) * 128                  # lane-tile-aligned offset of w2
    n = lambda a: np.asarray(a, np.float32)

    sel = np.zeros((C, Ch2), np.float32)                   # mel0 channel -> y column
    pe_base = np.zeros((Ch2,), np.float32)                 # hoisted constant pe_slice
    w1_bd = np.zeros((Ch2, Ch2), np.float32)
    w2_bd = np.zeros((Ch2, Ch2), np.float32)
    b1_cat = np.zeros((Ch2,), np.float32)
    b2_cat = np.zeros((Ch2,), np.float32)
    wc_cat = np.zeros((cd, Ch2), np.float32)
    bc_cat = np.zeros((Ch2,), np.float32)
    w_out_pack = np.zeros((Ch2, 3 * C), np.float32)        # taps lane-concatenated
    b_out = np.zeros((C,), np.float32)

    col = off = ocol = 0
    for i, bsz in enumerate(bands):
        ch = bsz + cd
        sel[off:off + bsz, col:col + bsz] = np.eye(bsz, dtype=np.float32)
        # pe_slice is identical for every (b, t): precompute one (cond_dim,) vector
        pe = n(p['freq_pe'])[off:off + bsz, :]             # (bsz, cd)
        pe_row = pe.T.reshape(-1)                          # (cd*bsz,)  [d*bsz + c]
        pe_vec = pe_row @ n(p[f'pe_w_{i}']) + n(p[f'pe_b_{i}'])
        pe_base[col + bsz:col + ch] = pe_vec
        # S4-gate weights, transposed for the rows layout, block-diag over bands
        w1_bd[col:col + ch, col:col + ch] = n(p[f's4_w1_{i}']).T
        w2_bd[col:col + ch, col:col + ch] = n(p[f's4_w2_{i}']).T
        b1_cat[col:col + ch] = n(p[f's4_b1_{i}'])
        b2_cat[col:col + ch] = n(p[f's4_b2_{i}'])
        wc_cat[:, col:col + ch] = n(p[f's4_wc_{i}'])
        bc_cat[col:col + ch] = n(p[f's4_bc_{i}'])
        # spectral-normalised band output conv: 3 block-diag taps, lane-concatenated
        wo = n(p[f'out_w_{i}'])                            # (bsz, ch, 3)
        for k in range(3):
            w_out_pack[col:col + ch, k * C + ocol:k * C + ocol + bsz] = wo[:, :, k].T
        b_out[ocol:ocol + bsz] = n(p[f'out_b_{i}'])
        col += ch; off += bsz; ocol += bsz

    # acoustic Linear folded together with band split + pe concat
    td = c['text_dim']
    ac_w, ac_b = n(p['ac_w']), n(p['ac_b'])
    w_txt2y = ac_w[:td, :] @ sel                                       # (text_dim, Ch2)
    y_aux = np.stack([ac_w[td, :] @ sel,                               # f0 row
                      ac_w[td + 1, :] @ sel,                           # energy row
                      ac_b @ sel + pe_base])                           # bias (+pe) row

    # conditioning MLP second layers folded through the per-band cond projection
    a_f0 = n(p['cf0_w2']) @ wc_cat                                     # (half, Ch2)
    a_en = n(p['cen_w2']) @ wc_cat
    a_sty = n(p['sty_w']) @ wc_cat                                     # (style_dim, Ch2)
    a_seg = n(p['seg_w']) @ wc_cat                                     # (text_dim, Ch2)
    b_cp = ((n(p['cf0_b2']) + n(p['cen_b2']) + n(p['sty_b']) + n(p['seg_b'])) @ wc_cat
            + bc_cat)

    # (item 3) fused f0/energy first layers: lanes [0:half] = f0, [half:cd] = energy
    fe_l1 = np.zeros((2, cd), np.float32)
    fe_l1[0, :half] = n(p['cf0_w1']).reshape(-1)
    fe_l1[0, half:] = n(p['cen_w1']).reshape(-1)
    fe_l1[1, :half] = n(p['cf0_b1'])
    fe_l1[1, half:] = n(p['cen_b1'])
    a_fe = np.concatenate([a_f0, a_en], axis=0)                        # (cd, Ch2)

    # (item 4) per-batch style/segment projections; extra lane Ch2 reserved for beta
    a_sty_pack = np.concatenate([a_sty, np.zeros((a_sty.shape[0], 1), np.float32)], 1)
    a_seg_pack = np.concatenate([a_seg, np.zeros((a_seg.shape[0], 1), np.float32)], 1)
    mean_pool = np.zeros((B, rows), np.float32)                        # per-batch text mean
    expand = np.zeros((rows, B), np.float32)                           # one-hot batch->rows
    for b in range(B):
        mean_pool[b, b * T:(b + 1) * T] = 1.0 / T
        expand[b * T:(b + 1) * T, b] = 1.0

    # (item 9) beta scheduler params for pure VPU + lane-reduce evaluation
    bh = c['beta_hidden']
    beta_pack = np.zeros((4, bh), np.float32)
    beta_pack[0] = n(p['beta_w1']).reshape(-1)
    beta_pack[1] = n(p['beta_b1'])
    beta_pack[2] = n(p['beta_w2']).reshape(-1)
    beta_pack[3, 0] = n(p['beta_b2'])[0]

    # (item 2) fused S4 gate: w1 at lanes [0:Ch2], w2 at lanes [gate_off:gate_off+Ch2]
    w12 = np.zeros((Ch2, gate_off + Ch2), np.float32)
    w12[:, :Ch2] = w1_bd
    w12[:, gate_off:gate_off + Ch2] = w2_bd
    b12 = np.stack([b1_cat, b2_cat])

    # HSF conv taps, lane-concatenated -> one matmul per conv
    w_h1_pack = np.concatenate([n(p['hsf_w1'])[:, :, k].T for k in range(3)], axis=1)
    w_h2_pack = np.concatenate([n(p['hsf_w2'])[:, :, k].T for k in range(3)], axis=1)
    b_h1 = n(p['hsf_b1'])[None, :]
    b_h2 = n(p['hsf_b2'])[None, :]

    # VQ codebook. NOTE: distances use ||e||^2 - 2 z.e (the ||z||^2 term is a
    # per-row constant, argmin-invariant); the MSE uses the true zq - z diff.
    # The codebook is rounded to bf16 once so e_sq is consistent with the
    # bf16 inner-product matmul.
    cb = n(p['vq_cb'])
    cbq = cb.astype(jnp.bfloat16).astype(np.float32)
    cb_t = np.ascontiguousarray(cbq.T)                                 # (C, codes)
    e_sq = np.sum(cbq * cbq, axis=1)[None, :]                          # (1, codes)
    cb_pad = np.zeros((cb.shape[0], OUT_LANES), np.float32)            # lane-dense zq slab
    cb_pad[:, :C] = cbq

    # (item 1) batch-boundary 0/1 masks for the rolled k=3 conv taps
    tpos = np.arange(rows) % T
    bmask = np.stack([(tpos != 0).astype(np.float32),                  # valid t-1
                      (tpos != T - 1).astype(np.float32)], axis=1)     # valid t+1

    packed = dict(
        w_txt2y=w_txt2y, y_aux=y_aux, fe_l1=fe_l1, a_fe=a_fe, b_cp=b_cp[None, :],
        a_sty=a_sty_pack, a_seg=a_seg_pack, mean_pool=mean_pool, expand=expand,
        beta_pack=beta_pack, w12=w12, b12=b12,
        w_out=w_out_pack, b_out=b_out[None, :],
        w_h1=w_h1_pack, b_h1=b_h1, w_h2=w_h2_pack, b_h2=b_h2,
        cb_t=cb_t, e_sq=e_sq, cb_pad=cb_pad, bmask=bmask,
    )
    return {k: jnp.asarray(v, jnp.bfloat16 if k in BF16_KEYS else jnp.float32)
            for k, v in packed.items()}


# ----------------------------------------------------------------------------
# The single fused Pallas kernel
# ----------------------------------------------------------------------------

def _fused_refiner_kernel(
        # data
        text_ref, f0_ref, en_ref, style_ref, t_ref,
        # packed params (order == PACKED_KEYS)
        w_txt2y_ref, y_aux_ref, fe_l1_ref, a_fe_ref, b_cp_ref,
        a_sty_ref, a_seg_ref, mean_pool_ref, expand_ref, beta_pack_ref,
        w12_ref, b12_ref, w_out_ref, b_out_ref, w_h1_ref, b_h1_ref,
        w_h2_ref, b_h2_ref, cb_t_ref, e_sq_ref, cb_pad_ref, bmask_ref,
        # output
        out_ref,
        *, B, T, C, Ch2, cond_dim, hid, codes, gate_off, out_lanes):
    f32 = jnp.float32
    bf16 = jnp.bfloat16
    rows = B * T
    half = cond_dim // 2

    def mm(a, b):
        # explicit bf16 MXU operands (single-pass vmatmul), f32 accumulation
        return jnp.dot(a.astype(bf16), b.astype(bf16), preferred_element_type=f32)

    def silu(v):
        return v * jax.nn.sigmoid(v)

    text = text_ref[...]          # (rows, text_dim)   rows = (b, t) b-major
    f0 = f0_ref[...]              # (rows, 1)
    en = en_ref[...]              # (rows, 1)
    style = style_ref[...]        # (B, style_dim)
    t = t_ref[...]                # (B, 1)

    mask_prev = bmask_ref[:, 0:1]                             # (rows, 1) 0/1
    mask_next = bmask_ref[:, 1:2]

    # ---- acoustic Linear + band split + constant PE concat (one matmul) -----
    y_aux = y_aux_ref[...]                                    # (3, Ch2)
    y = (mm(text, w_txt2y_ref[...]) + f0 * y_aux[0:1, :]
         + en * y_aux[1:2, :] + y_aux[2:3, :])                # (rows, Ch2)

    # ---- f0 / energy conditioning, fused into one SiLU + one matmul ---------
    fe_l1 = fe_l1_ref[...]
    lane_cd = lax.broadcasted_iota(jnp.int32, (rows, cond_dim), 1)
    fe_in = jnp.where(lane_cd < half, f0, en)                 # (rows, cond_dim)
    h_fe = silu(fe_in * fe_l1[0:1, :] + fe_l1[1:2, :])
    cp = mm(h_fe, a_fe_ref[...]) + b_cp_ref[...]              # (rows, Ch2)

    # ---- beta scheduler: pure VPU math + cross-lane reduce (no MXU pass) ----
    bp = beta_pack_ref[...]                                   # (4, beta_hidden)
    h_b = silu(t * bp[0:1, :] + bp[1:2, :])                   # (B, hidden)
    beta = jax.nn.sigmoid(
        jnp.sum(h_b * bp[2:3, :], axis=1, keepdims=True) + bp[3:4, 0:1])   # (B, 1)

    # ---- per-batch style / segment cond + beta, expanded via one-hot matmul --
    tmean = mm(mean_pool_ref[...], text)                      # (B, text_dim)
    pb = mm(style, a_sty_ref[...]) + mm(tmean, a_seg_ref[...])  # (B, Ch2+1)
    lane_pb = lax.broadcasted_iota(jnp.int32, (B, Ch2 + 1), 1)
    pb = pb + jnp.where(lane_pb == Ch2, beta, 0.0)            # beta rides in lane Ch2
    pbr = mm(expand_ref[...], pb)                             # (rows, Ch2+1)
    cp = cp + pbr[:, :Ch2]
    beta_rows = pbr[:, Ch2:Ch2 + 1]                           # (rows, 1)

    # ---- RevBlock(S4) stand-in: gated mixing, both bands block-diag, fused ---
    b12 = b12_ref[...]
    ag = mm(y, w12_ref[...])                                  # (rows, gate_off+Ch2)
    a = ag[:, :Ch2] + b12[0:1, :] + cp
    g = ag[:, gate_off:gate_off + Ch2] + b12[1:2, :]
    y = y + a * jax.nn.sigmoid(g)

    # ---- k=3 / pad=1 convs: ONE matmul per conv (taps lane-concatenated);
    #      the time shift is an XLU sublane roll of the result + boundary mask.
    def conv3(x, w_ref, b_ref, cout):
        yv = mm(x, w_ref[...])                                # (rows, 3*cout)
        prev = pltpu.roll(yv[:, 0:cout], shift=1, axis=0)          # tap 0 uses x[t-1]
        nxt = pltpu.roll(yv[:, 2 * cout:3 * cout], shift=rows - 1, axis=0)  # x[t+1]
        return (mask_prev * prev + yv[:, cout:2 * cout] + mask_next * nxt
                + b_ref[...])

    merged = conv3(y, w_out_ref, b_out_ref, C)                # (rows, C) both bands

    # ---- HSF layer stand-in ---------------------------------------------------
    h1 = silu(conv3(merged, w_h1_ref, b_h1_ref, hid))
    hn = conv3(h1, w_h2_ref, b_h2_ref, C)

    # ---- z = merged + beta * hn -----------------------------------------------
    z = merged + beta_rows * hn

    # ---- nearest-neighbour VQ + MSE (fused, no HBM round-trips) ---------------
    # dist drops the per-row ||z||^2 constant (argmin-invariant); MSE uses true diff.
    dist = e_sq_ref[...] - 2.0 * mm(z, cb_t_ref[...])         # (rows, codes)
    ci = lax.broadcasted_iota(jnp.int32, (rows, codes), 1)
    min_d = jnp.min(dist, axis=1, keepdims=True)
    first = jnp.min(jnp.where(dist <= min_d, ci, codes), axis=1, keepdims=True)
    onehot = (ci == first).astype(f32)                        # (rows, codes)
    zq_pad = mm(onehot, cb_pad_ref[...])                      # (rows, out_lanes), zq in [0:C]

    diff = zq_pad[:, :C] - z
    per_row = jnp.sum(diff * diff, axis=1, keepdims=True)     # (rows, 1)
    vql = jnp.sum(per_row, axis=0, keepdims=True) * (1.0 / (rows * C))   # (1, 1)

    # ---- lane-dense output: zq in lanes [0:C], vql in lane out_lanes-1 of row 0
    ridx = lax.broadcasted_iota(jnp.int32, (rows, out_lanes), 0)
    lidx = lax.broadcasted_iota(jnp.int32, (rows, out_lanes), 1)
    out_ref[...] = zq_pad + jnp.where((ridx == 0) & (lidx == out_lanes - 1), vql, 0.0)


# ----------------------------------------------------------------------------
# Forward pass: ONE pallas_call; only free slices / reshapes outside the kernel.
# ----------------------------------------------------------------------------

@jax.jit
def score_sde_refiner_forward(packed, text_emb, f0, energy, speaker, style, t):
    del speaker                                   # unused by the stand-in acoustic model
    c = CFG
    B, T, text_dim = text_emb.shape
    C = c['C']
    rows = B * T
    Ch2 = sum(b + c['cond_dim'] for b in c['bands'])
    gate_off = ((Ch2 + 127) // 128) * 128

    kern = functools.partial(
        _fused_refiner_kernel, B=B, T=T, C=C, Ch2=Ch2,
        cond_dim=c['cond_dim'], hid=c['hsf_hidden'], codes=c['vq_codes'],
        gate_off=gate_off, out_lanes=OUT_LANES)

    vmem = pl.BlockSpec(memory_space=pltpu.MemorySpace.VMEM)
    n_in = 5 + len(PACKED_KEYS)

    out = pl.pallas_call(
        kern,
        out_shape=jax.ShapeDtypeStruct((rows, OUT_LANES), jnp.float32),
        in_specs=[vmem] * n_in,
        out_specs=vmem,
    )(text_emb.reshape(rows, text_dim).astype(jnp.float32),
      f0.reshape(rows, 1).astype(jnp.float32),
      energy.reshape(rows, 1).astype(jnp.float32),
      style.astype(jnp.float32),
      t.astype(jnp.float32),
      *[packed[k] for k in PACKED_KEYS])

    # rows are (b, t)-major with channels in lanes [0:C] -> cheap slice + reshape
    mel_ref = out[:, :C].reshape(B, T, C)
    vql = out[0, OUT_LANES - 1]
    return mel_ref, t, vql, None, None


# ----------------------------------------------------------------------------
# Main
# ----------------------------------------------------------------------------

if __name__ == "__main__":
    key = jax.random.PRNGKey(0)
    k_par, k_txt, k_f0, k_en, k_sty, k_t = jax.random.split(key, 6)

    params = init_params(k_par)
    packed = pack_params(params)

    B, T = CFG['B'], CFG['T']
    text_emb = jax.random.normal(k_txt, (B, T, CFG['text_dim']), jnp.float32)
    f0 = jax.random.normal(k_f0, (B, T), jnp.float32)
    energy = jax.random.normal(k_en, (B, T), jnp.float32)
    style = jax.random.normal(k_sty, (B, CFG['style_dim']), jnp.float32)
    t = jax.random.uniform(k_t, (B, 1), jnp.float32)
    speaker = None

    mel_ref, t_out, vql, _, _ = score_sde_refiner_forward(
        packed, text_emb, f0, energy, speaker, style, t)

    jax.block_until_ready(mel_ref)
    jax.block_until_ready(vql)

    assert mel_ref.shape == (B, T, CFG['C'])
    assert t_out.shape == (B, 1)
    assert np.isfinite(np.asarray(mel_ref)).all()
    assert np.isfinite(float(vql))
    print("KERNEL_OK")
</pallas_src>

<mosaic_0001>
module attributes {stable_mosaic.version = 11 : i64} {
  func.func @_fused_refiner_kernel(%arg0: memref<32x32xf32, #tpu.memory_space<vmem>>, %arg1: memref<32x1xf32, #tpu.memory_space<vmem>>, %arg2: memref<32x1xf32, #tpu.memory_space<vmem>>, %arg3: memref<2x16xf32, #tpu.memory_space<vmem>>, %arg4: memref<2x1xf32, #tpu.memory_space<vmem>>, %arg5: memref<32x72xbf16, #tpu.memory_space<vmem>>, %arg6: memref<3x72xf32, #tpu.memory_space<vmem>>, %arg7: memref<2x32xf32, #tpu.memory_space<vmem>>, %arg8: memref<32x72xbf16, #tpu.memory_space<vmem>>, %arg9: memref<1x72xf32, #tpu.memory_space<vmem>>, %arg10: memref<16x73xbf16, #tpu.memory_space<vmem>>, %arg11: memref<32x73xbf16, #tpu.memory_space<vmem>>, %arg12: memref<2x32xbf16, #tpu.memory_space<vmem>>, %arg13: memref<32x2xbf16, #tpu.memory_space<vmem>>, %arg14: memref<4x16xf32, #tpu.memory_space<vmem>>, %arg15: memref<72x200xbf16, #tpu.memory_space<vmem>>, %arg16: memref<2x72xf32, #tpu.memory_space<vmem>>, %arg17: memref<72x24xbf16, #tpu.memory_space<vmem>>, %arg18: memref<1x8xf32, #tpu.memory_space<vmem>>, %arg19: memref<8x48xbf16, #tpu.memory_space<vmem>>, %arg20: memref<1x16xf32, #tpu.memory_space<vmem>>, %arg21: memref<16x24xbf16, #tpu.memory_space<vmem>>, %arg22: memref<1x8xf32, #tpu.memory_space<vmem>>, %arg23: memref<8x32xbf16, #tpu.memory_space<vmem>>, %arg24: memref<1x32xf32, #tpu.memory_space<vmem>>, %arg25: memref<32x128xbf16, #tpu.memory_space<vmem>>, %arg26: memref<32x2xf32, #tpu.memory_space<vmem>>, %arg27: memref<32x128xf32, #tpu.memory_space<vmem>>) attributes {dimension_semantics = [], scalar_prefetch = 0 : i64, scratch_operands = 0 : i64, tpu.core_type = #tpu.core_type<tc>} {
    %c0 = arith.constant 0 : index
    %c0_0 = arith.constant 0 : index
    %0 = vector.load %arg0[%c0, %c0_0] : memref<32x32xf32, #tpu.memory_space<vmem>>, vector<32x32xf32>
    %c0_1 = arith.constant 0 : index
    %c0_2 = arith.constant 0 : index
    %1 = vector.load %arg1[%c0_1, %c0_2] : memref<32x1xf32, #tpu.memory_space<vmem>>, vector<32x1xf32>
    %c0_3 = arith.constant 0 : index
    %c0_4 = arith.constant 0 : index
    %2 = vector.load %arg2[%c0_3, %c0_4] : memref<32x1xf32, #tpu.memory_space<vmem>>, vector<32x1xf32>
    %c0_5 = arith.constant 0 : index
    %c0_6 = arith.constant 0 : index
    %3 = vector.load %arg3[%c0_5, %c0_6] : memref<2x16xf32, #tpu.memory_space<vmem>>, vector<2x16xf32>
    %c0_7 = arith.constant 0 : index
    %c0_8 = arith.constant 0 : index
    %4 = vector.load %arg4[%c0_7, %c0_8] : memref<2x1xf32, #tpu.memory_space<vmem>>, vector<2x1xf32>
    %c0_9 = arith.constant 0 : index
    %c0_10 = arith.constant 0 : index
    %5 = vector.load %arg26[%c0_9, %c0_10] : memref<32x2xf32, #tpu.memory_space<vmem>>, vector<32x1xf32>
    %c0_11 = arith.constant 0 : index
    %c1 = arith.constant 1 : index
    %6 = vector.load %arg26[%c0_11, %c1] : memref<32x2xf32, #tpu.memory_space<vmem>>, vector<32x1xf32>
    %c0_12 = arith.constant 0 : index
    %c0_13 = arith.constant 0 : index
    %7 = vector.load %arg6[%c0_12, %c0_13] : memref<3x72xf32, #tpu.memory_space<vmem>>, vector<3x72xf32>
    %c0_14 = arith.constant 0 : index
    %c0_15 = arith.constant 0 : index
    %8 = vector.load %arg5[%c0_14, %c0_15] : memref<32x72xbf16, #tpu.memory_space<vmem>>, vector<32x72xbf16>
    %9 = arith.truncf %0 : vector<32x32xf32> to vector<32x32xbf16>
    %cst = arith.constant dense<0.000000e+00> : vector<32x72xf32>
    %10 = tpu.matmul %9, %8, %cst {dimension_numbers = #tpu.dot_dimension_numbers<[1], [0], [0], [1], [0, 0, 1, 1], [], []>} : vector<32x32xbf16>, vector<32x72xbf16>, vector<32x72xf32> -> vector<32x72xf32>
    %11 = vector.extract_strided_slice %7 {offsets = [0, 0], sizes = [1, 72], strides = [1, 1]} : vector<3x72xf32> to vector<1x72xf32>
    %12 = vector.broadcast %1 : vector<32x1xf32> to vector<32x72xf32>
    %13 = vector.broadcast %11 : vector<1x72xf32> to vector<32x72xf32>
    %14 = arith.mulf %12, %13 : vector<32x72xf32>
    %15 = arith.addf %10, %14 : vector<32x72xf32>
    %16 = vector.extract_strided_slice %7 {offsets = [1, 0], sizes = [1, 72], strides = [1, 1]} : vector<3x72xf32> to vector<1x72xf32>
    %17 = vector.broadcast %2 : vector<32x1xf32> to vector<32x72xf32>
    %18 = vector.broadcast %16 : vector<1x72xf32> to vector<32x72xf32>
    %19 = arith.mulf %17, %18 : vector<32x72xf32>
    %20 = arith.addf %15, %19 : vector<32x72xf32>
    %21 = vector.extract_strided_slice %7 {offsets = [2, 0], sizes = [1, 72], strides = [1, 1]} : vector<3x72xf32> to vector<1x72xf32>
    %22 = vector.broadcast %21 : vector<1x72xf32> to vector<32x72xf32>
    %23 = arith.addf %20, %22 : vector<32x72xf32>
    %c0_16 = arith.constant 0 : index
    %c0_17 = arith.constant 0 : index
    %24 = vector.load %arg7[%c0_16, %c0_17] : memref<2x32xf32, #tpu.memory_space<vmem>>, vector<2x32xf32>
    %25 = tpu.iota {dimensions = array<i32: 1>} : vector<32x32xi32>
    %c16_i32 = arith.constant 16 : i32
    %26 = vector.broadcast %c16_i32 : i32 to vector<32x32xi32>
    %27 = arith.cmpi slt, %25, %26 : vector<32x32xi32>
    %28 = vector.shape_cast %1 : vector<32x1xf32> to vector<32x1xf32>
    %29 = vector.broadcast %28 : vector<32x1xf32> to vector<32x32xf32>
    %30 = vector.shape_cast %2 : vector<32x1xf32> to vector<32x1xf32>
    %31 = vector.broadcast %30 : vector<32x1xf32> to vector<32x32xf32>
    %32 = arith.select %27, %29, %31 : vector<32x32xi1>, vector<32x32xf32>
    %33 = vector.extract_strided_slice %24 {offsets = [0, 0], sizes = [1, 32], strides = [1, 1]} : vector<2x32xf32> to vector<1x32xf32>
    %34 = vector.broadcast %33 : vector<1x32xf32> to vector<32x32xf32>
    %35 = arith.mulf %32, %34 : vector<32x32xf32>
    %36 = vector.extract_strided_slice %24 {offsets = [1, 0], sizes = [1, 32], strides = [1, 1]} : vector<2x32xf32> to vector<1x32xf32>
    %37 = vector.broadcast %36 : vector<1x32xf32> to vector<32x32xf32>
    %38 = arith.addf %35, %37 : vector<32x32xf32>
    %39 = arith.negf %38 : vector<32x32xf32>
    %40 = math.exp %39 : vector<32x32xf32>
    %cst_18 = arith.constant 1.000000e+00 : f32
    %41 = vector.broadcast %cst_18 : f32 to vector<32x32xf32>
    %42 = arith.addf %41, %40 : vector<32x32xf32>
    %43 = arith.divf %41, %42 : vector<32x32xf32>
    %44 = arith.mulf %38, %43 : vector<32x32xf32>
    %c0_19 = arith.constant 0 : index
    %c0_20 = arith.constant 0 : index
    %45 = vector.load %arg8[%c0_19, %c0_20] : memref<32x72xbf16, #tpu.memory_space<vmem>>, vector<32x72xbf16>
    %46 = arith.truncf %44 : vector<32x32xf32> to vector<32x32xbf16>
    %cst_21 = arith.constant dense<0.000000e+00> : vector<32x72xf32>
    %47 = tpu.matmul %46, %45, %cst_21 {dimension_numbers = #tpu.dot_dimension_numbers<[1], [0], [0], [1], [0, 0, 1, 1], [], []>} : vector<32x32xbf16>, vector<32x72xbf16>, vector<32x72xf32> -> vector<32x72xf32>
    %c0_22 = arith.constant 0 : index
    %c0_23 = arith.constant 0 : index
    %48 = vector.load %arg9[%c0_22, %c0_23] : memref<1x72xf32, #tpu.memory_space<vmem>>, vector<1x72xf32>
    %49 = vector.broadcast %48 : vector<1x72xf32> to vector<32x72xf32>
    %50 = arith.addf %47, %49 : vector<32x72xf32>
    %c0_24 = arith.constant 0 : index
    %c0_25 = arith.constant 0 : index
    %51 = vector.load %arg14[%c0_24, %c0_25] : memref<4x16xf32, #tpu.memory_space<vmem>>, vector<4x16xf32>
    %52 = vector.extract_strided_slice %51 {offsets = [0, 0], sizes = [1, 16], strides = [1, 1]} : vector<4x16xf32> to vector<1x16xf32>
    %53 = vector.broadcast %4 : vector<2x1xf32> to vector<2x16xf32>
    %54 = vector.broadcast %52 : vector<1x16xf32> to vector<2x16xf32>
    %55 = arith.mulf %53, %54 : vector<2x16xf32>
    %56 = vector.extract_strided_slice %51 {offsets = [1, 0], sizes = [1, 16], strides = [1, 1]} : vector<4x16xf32> to vector<1x16xf32>
    %57 = vector.broadcast %56 : vector<1x16xf32> to vector<2x16xf32>
    %58 = arith.addf %55, %57 : vector<2x16xf32>
    %59 = arith.negf %58 : vector<2x16xf32>
    %60 = math.exp %59 : vector<2x16xf32>
    %cst_26 = arith.constant 1.000000e+00 : f32
    %61 = vector.broadcast %cst_26 : f32 to vector<2x16xf32>
    %62 = arith.addf %61, %60 : vector<2x16xf32>
    %63 = arith.divf %61, %62 : vector<2x16xf32>
    %64 = arith.mulf %58, %63 : vector<2x16xf32>
    %65 = vector.extract_strided_slice %51 {offsets = [2, 0], sizes = [1, 16], strides = [1, 1]} : vector<4x16xf32> to vector<1x16xf32>
    %66 = vector.broadcast %65 : vector<1x16xf32> to vector<2x16xf32>
    %67 = arith.mulf %64, %66 : vector<2x16xf32>
    %cst_27 = arith.constant dense<0.000000e+00> : vector<2xf32>
    %68 = vector.multi_reduction <add>, %67, %cst_27 [1] : vector<2x16xf32> to vector<2xf32>
    %69 = vector.shape_cast %68 : vector<2xf32> to vector<2x1xf32>
    %70 = vector.extract_strided_slice %51 {offsets = [3, 0], sizes = [1, 1], strides = [1, 1]} : vector<4x16xf32> to vector<1x1xf32>
    %71 = vector.broadcast %70 : vector<1x1xf32> to vector<2x1xf32>
    %72 = arith.addf %69, %71 : vector<2x1xf32>
    %73 = arith.negf %72 : vector<2x1xf32>
    %74 = math.exp %73 : vector<2x1xf32>
    %cst_28 = arith.constant 1.000000e+00 : f32
    %75 = vector.broadcast %cst_28 : f32 to vector<2x1xf32>
    %76 = arith.addf %75, %74 : vector<2x1xf32>
    %77 = arith.divf %75, %76 : vector<2x1xf32>
    %c0_29 = arith.constant 0 : index
    %c0_30 = arith.constant 0 : index
    %78 = vector.load %arg12[%c0_29, %c0_30] : memref<2x32xbf16, #tpu.memory_space<vmem>>, vector<2x32xbf16>
    %79 = arith.truncf %0 : vector<32x32xf32> to vector<32x32xbf16>
    %cst_31 = arith.constant dense<0.000000e+00> : vector<2x32xf32>
    %80 = tpu.matmul %78, %79, %cst_31 {dimension_numbers = #tpu.dot_dimension_numbers<[1], [0], [0], [1], [0, 0, 1, 1], [], []>} : vector<2x32xbf16>, vector<32x32xbf16>, vector<2x32xf32> -> vector<2x32xf32>
    %c0_32 = arith.constant 0 : index
    %c0_33 = arith.constant 0 : index
    %81 = vector.load %arg10[%c0_32, %c0_33] : memref<16x73xbf16, #tpu.memory_space<vmem>>, vector<16x73xbf16>
    %82 = arith.truncf %3 : vector<2x16xf32> to vector<2x16xbf16>
    %cst_34 = arith.constant dense<0.000000e+00> : vector<2x73xf32>
    %83 = tpu.matmul %82, %81, %cst_34 {dimension_numbers = #tpu.dot_dimension_numbers<[1], [0], [0], [1], [0, 0, 1, 1], [], []>} : vector<2x16xbf16>, vector<16x73xbf16>, vector<2x73xf32> -> vector<2x73xf32>
    %c0_35 = arith.constant 0 : index
    %c0_36 = arith.constant 0 : index
    %84 = vector.load %arg11[%c0_35, %c0_36] : memref<32x73xbf16, #tpu.memory_space<vmem>>, vector<32x73xbf16>
    %85 = arith.truncf %80 : vector<2x32xf32> to vector<2x32xbf16>
    %cst_37 = arith.constant dense<0.000000e+00> : vector<2x73xf32>
    %86 = tpu.matmul %85, %84, %cst_37 {dimension_numbers = #tpu.dot_dimension_numbers<[1], [0], [0], [1], [0, 0, 1, 1], [], []>} : vector<2x32xbf16>, vector<32x73xbf16>, vector<2x73xf32> -> vector<2x73xf32>
    %87 = arith.addf %83, %86 : vector<2x73xf32>
    %88 = tpu.iota {dimensions = array<i32: 1>} : vector<2x73xi32>
    %c72_i32 = arith.constant 72 : i32
    %89 = vector.broadcast %c72_i32 : i32 to vector<2x73xi32>
    %90 = arith.cmpi eq, %88, %89 : vector<2x73xi32>
    %cst_38 = arith.constant 0.000000e+00 : f32
    %91 = vector.shape_cast %77 : vector<2x1xf32> to vector<2x1xf32>
    %92 = vector.broadcast %91 : vector<2x1xf32> to vector<2x73xf32>
    %93 = vector.broadcast %cst_38 : f32 to vector<2x73xf32>
    %94 = arith.select %90, %92, %93 : vector<2x73xi1>, vector<2x73xf32>
    %95 = arith.addf %87, %94 : vector<2x73xf32>
    %c0_39 = arith.constant 0 : index
    %c0_40 = arith.constant 0 : index
    %96 = vector.load %arg13[%c0_39, %c0_40] : memref<32x2xbf16, #tpu.memory_space<vmem>>, vector<32x2xbf16>
    %97 = arith.truncf %95 : vector<2x73xf32> to vector<2x73xbf16>
    %cst_41 = arith.constant dense<0.000000e+00> : vector<32x73xf32>
    %98 = tpu.matmul %96, %97, %cst_41 {dimension_numbers = #tpu.dot_dimension_numbers<[1], [0], [0], [1], [0, 0, 1, 1], [], []>} : vector<32x2xbf16>, vector<2x73xbf16>, vector<32x73xf32> -> vector<32x73xf32>
    %99 = vector.extract_strided_slice %98 {offsets = [0, 0], sizes = [32, 72], strides = [1, 1]} : vector<32x73xf32> to vector<32x72xf32>
    %100 = arith.addf %50, %99 : vector<32x72xf32>
    %101 = vector.extract_strided_slice %98 {offsets = [0, 72], sizes = [32, 1], strides = [1, 1]} : vector<32x73xf32> to vector<32x1xf32>
    %c0_42 = arith.constant 0 : index
    %c0_43 = arith.constant 0 : index
    %102 = vector.load %arg16[%c0_42, %c0_43] : memref<2x72xf32, #tpu.memory_space<vmem>>, vector<2x72xf32>
    %c0_44 = arith.constant 0 : index
    %c0_45 = arith.constant 0 : index
    %103 = vector.load %arg15[%c0_44, %c0_45] : memref<72x200xbf16, #tpu.memory_space<vmem>>, vector<72x200xbf16>
    %104 = arith.truncf %23 : vector<32x72xf32> to vector<32x72xbf16>
    %cst_46 = arith.constant dense<0.000000e+00> : vector<32x200xf32>
    %105 = tpu.matmul %104, %103, %cst_46 {dimension_numbers = #tpu.dot_dimension_numbers<[1], [0], [0], [1], [0, 0, 1, 1], [], []>} : vector<32x72xbf16>, vector<72x200xbf16>, vector<32x200xf32> -> vector<32x200xf32>
    %106 = vector.extract_strided_slice %105 {offsets = [0, 0], sizes = [32, 72], strides = [1, 1]} : vector<32x200xf32> to vector<32x72xf32>
    %107 = vector.extract_strided_slice %102 {offsets = [0, 0], sizes = [1, 72], strides = [1, 1]} : vector<2x72xf32> to vector<1x72xf32>
    %108 = vector.broadcast %107 : vector<1x72xf32> to vector<32x72xf32>
    %109 = arith.addf %106, %108 : vector<32x72xf32>
    %110 = arith.addf %109, %100 : vector<32x72xf32>
    %111 = vector.extract_strided_slice %105 {offsets = [0, 128], sizes = [32, 72], strides = [1, 1]} : vector<32x200xf32> to vector<32x72xf32>
    %112 = vector.extract_strided_slice %102 {offsets = [1, 0], sizes = [1, 72], strides = [1, 1]} : vector<2x72xf32> to vector<1x72xf32>
    %113 = vector.broadcast %112 : vector<1x72xf32> to vector<32x72xf32>
    %114 = arith.addf %111, %113 : vector<32x72xf32>
    %115 = arith.negf %114 : vector<32x72xf32>
    %116 = math.exp %115 : vector<32x72xf32>
    %cst_47 = arith.constant 1.000000e+00 : f32
    %117 = vector.broadcast %cst_47 : f32 to vector<32x72xf32>
    %118 = arith.addf %117, %116 : vector<32x72xf32>
    %119 = arith.divf %117, %118 : vector<32x72xf32>
    %120 = arith.mulf %110, %119 : vector<32x72xf32>
    %121 = arith.addf %23, %120 : vector<32x72xf32>
    %c0_48 = arith.constant 0 : index
    %c0_49 = arith.constant 0 : index
    %122 = vector.load %arg17[%c0_48, %c0_49] : memref<72x24xbf16, #tpu.memory_space<vmem>>, vector<72x24xbf16>
    %123 = arith.truncf %121 : vector<32x72xf32> to vector<32x72xbf16>
    %cst_50 = arith.constant dense<0.000000e+00> : vector<32x24xf32>
    %124 = tpu.matmul %123, %122, %cst_50 {dimension_numbers = #tpu.dot_dimension_numbers<[1], [0], [0], [1], [0, 0, 1, 1], [], []>} : vector<32x72xbf16>, vector<72x24xbf16>, vector<32x24xf32> -> vector<32x24xf32>
    %125 = vector.extract_strided_slice %124 {offsets = [0, 0], sizes = [32, 8], strides = [1, 1]} : vector<32x24xf32> to vector<32x8xf32>
    %c1_i32 = arith.constant 1 : i32
    %126 = tpu.dynamic_rotate %125 by %c1_i32 dim 0 : vector<32x8xf32>, i32 -> vector<32x8xf32>
    %127 = vector.extract_strided_slice %124 {offsets = [0, 16], sizes = [32, 8], strides = [1, 1]} : vector<32x24xf32> to vector<32x8xf32>
    %c31_i32 = arith.constant 31 : i32
    %128 = tpu.dynamic_rotate %127 by %c31_i32 dim 0 : vector<32x8xf32>, i32 -> vector<32x8xf32>
    %129 = vector.broadcast %5 : vector<32x1xf32> to vector<32x8xf32>
    %130 = arith.mulf %129, %126 : vector<32x8xf32>
    %131 = vector.extract_strided_slice %124 {offsets = [0, 8], sizes = [32, 8], strides = [1, 1]} : vector<32x24xf32> to vector<32x8xf32>
    %132 = arith.addf %130, %131 : vector<32x8xf32>
    %133 = vector.broadcast %6 : vector<32x1xf32> to vector<32x8xf32>
    %134 = arith.mulf %133, %128 : vector<32x8xf32>
    %135 = arith.addf %132, %134 : vector<32x8xf32>
    %c0_51 = arith.constant 0 : index
    %c0_52 = arith.constant 0 : index
    %136 = vector.load %arg18[%c0_51, %c0_52] : memref<1x8xf32, #tpu.memory_space<vmem>>, vector<1x8xf32>
    %137 = vector.broadcast %136 : vector<1x8xf32> to vector<32x8xf32>
    %138 = arith.addf %135, %137 : vector<32x8xf32>
    %c0_53 = arith.constant 0 : index
    %c0_54 = arith.constant 0 : index
    %139 = vector.load %arg19[%c0_53, %c0_54] : memref<8x48xbf16, #tpu.memory_space<vmem>>, vector<8x48xbf16>
    %140 = arith.truncf %138 : vector<32x8xf32> to vector<32x8xbf16>
    %cst_55 = arith.constant dense<0.000000e+00> : vector<32x48xf32>
    %141 = tpu.matmul %140, %139, %cst_55 {dimension_numbers = #tpu.dot_dimension_numbers<[1], [0], [0], [1], [0, 0, 1, 1], [], []>} : vector<32x8xbf16>, vector<8x48xbf16>, vector<32x48xf32> -> vector<32x48xf32>
    %142 = vector.extract_strided_slice %141 {offsets = [0, 0], sizes = [32, 16], strides = [1, 1]} : vector<32x48xf32> to vector<32x16xf32>
    %c1_i32_56 = arith.constant 1 : i32
    %143 = tpu.dynamic_rotate %142 by %c1_i32_56 dim 0 : vector<32x16xf32>, i32 -> vector<32x16xf32>
    %144 = vector.extract_strided_slice %141 {offsets = [0, 32], sizes = [32, 16], strides = [1, 1]} : vector<32x48xf32> to vector<32x16xf32>
    %c31_i32_57 = arith.constant 31 : i32
    %145 = tpu.dynamic_rotate %144 by %c31_i32_57 dim 0 : vector<32x16xf32>, i32 -> vector<32x16xf32>
    %146 = vector.broadcast %5 : vector<32x1xf32> to vector<32x16xf32>
    %147 = arith.mulf %146, %143 : vector<32x16xf32>
    %148 = vector.extract_strided_slice %141 {offsets = [0, 16], sizes = [32, 16], strides = [1, 1]} : vector<32x48xf32> to vector<32x16xf32>
    %149 = arith.addf %147, %148 : vector<32x16xf32>
    %150 = vector.broadcast %6 : vector<32x1xf32> to vector<32x16xf32>
    %151 = arith.mulf %150, %145 : vector<32x16xf32>
    %152 = arith.addf %149, %151 : vector<32x16xf32>
    %c0_58 = arith.constant 0 : index
    %c0_59 = arith.constant 0 : index
    %153 = vector.load %arg20[%c0_58, %c0_59] : memref<1x16xf32, #tpu.memory_space<vmem>>, vector<1x16xf32>
    %154 = vector.broadcast %153 : vector<1x16xf32> to vector<32x16xf32>
    %155 = arith.addf %152, %154 : vector<32x16xf32>
    %156 = arith.negf %155 : vector<32x16xf32>
    %157 = math.exp %156 : vector<32x16xf32>
    %cst_60 = arith.constant 1.000000e+00 : f32
    %158 = vector.broadcast %cst_60 : f32 to vector<32x16xf32>
    %159 = arith.addf %158, %157 : vector<32x16xf32>
    %160 = arith.divf %158, %159 : vector<32x16xf32>
    %161 = arith.mulf %155, %160 : vector<32x16xf32>
    %c0_61 = arith.constant 0 : index
    %c0_62 = arith.constant 0 : index
    %162 = vector.load %arg21[%c0_61, %c0_62] : memref<16x24xbf16, #tpu.memory_space<vmem>>, vector<16x24xbf16>
    %163 = arith.truncf %161 : vector<32x16xf32> to vector<32x16xbf16>
    %cst_63 = arith.constant dense<0.000000e+00> : vector<32x24xf32>
    %164 = tpu.matmul %163, %162, %cst_63 {dimension_numbers = #tpu.dot_dimension_numbers<[1], [0], [0], [1], [0, 0, 1, 1], [], []>} : vector<32x16xbf16>, vector<16x24xbf16>, vector<32x24xf32> -> vector<32x24xf32>
    %165 = vector.extract_strided_slice %164 {offsets = [0, 0], sizes = [32, 8], strides = [1, 1]} : vector<32x24xf32> to vector<32x8xf32>
    %c1_i32_64 = arith.constant 1 : i32
    %166 = tpu.dynamic_rotate %165 by %c1_i32_64 dim 0 : vector<32x8xf32>, i32 -> vector<32x8xf32>
    %167 = vector.extract_strided_slice %164 {offsets = [0, 16], sizes = [32, 8], strides = [1, 1]} : vector<32x24xf32> to vector<32x8xf32>
    %c31_i32_65 = arith.constant 31 : i32
    %168 = tpu.dynamic_rotate %167 by %c31_i32_65 dim 0 : vector<32x8xf32>, i32 -> vector<32x8xf32>
    %169 = vector.broadcast %5 : vector<32x1xf32> to vector<32x8xf32>
    %170 = arith.mulf %169, %166 : vector<32x8xf32>
    %171 = vector.extract_strided_slice %164 {offsets = [0, 8], sizes = [32, 8], strides = [1, 1]} : vector<32x24xf32> to vector<32x8xf32>
    %172 = arith.addf %170, %171 : vector<32x8xf32>
    %173 = vector.broadcast %6 : vector<32x1xf32> to vector<32x8xf32>
    %174 = arith.mulf %173, %168 : vector<32x8xf32>
    %175 = arith.addf %172, %174 : vector<32x8xf32>
    %c0_66 = arith.constant 0 : index
    %c0_67 = arith.constant 0 : index
    %176 = vector.load %arg22[%c0_66, %c0_67] : memref<1x8xf32, #tpu.memory_space<vmem>>, vector<1x8xf32>
    %177 = vector.broadcast %176 : vector<1x8xf32> to vector<32x8xf32>
    %178 = arith.addf %175, %177 : vector<32x8xf32>
    %179 = vector.broadcast %101 : vector<32x1xf32> to vector<32x8xf32>
    %180 = arith.mulf %179, %178 : vector<32x8xf32>
    %181 = arith.addf %138, %180 : vector<32x8xf32>
    %c0_68 = arith.constant 0 : index
    %c0_69 = arith.constant 0 : index
    %182 = vector.load %arg24[%c0_68, %c0_69] : memref<1x32xf32, #tpu.memory_space<vmem>>, vector<1x32xf32>
    %c0_70 = arith.constant 0 : index
    %c0_71 = arith.constant 0 : index
    %183 = vector.load %arg23[%c0_70, %c0_71] : memref<8x32xbf16, #tpu.memory_space<vmem>>, vector<8x32xbf16>
    %184 = arith.truncf %181 : vector<32x8xf32> to vector<32x8xbf16>
    %cst_72 = arith.constant dense<0.000000e+00> : vector<32x32xf32>
    %185 = tpu.matmul %184, %183, %cst_72 {dimension_numbers = #tpu.dot_dimension_numbers<[1], [0], [0], [1], [0, 0, 1, 1], [], []>} : vector<32x8xbf16>, vector<8x32xbf16>, vector<32x32xf32> -> vector<32x32xf32>
    %cst_73 = arith.constant 2.000000e+00 : f32
    %186 = vector.broadcast %cst_73 : f32 to vector<32x32xf32>
    %187 = arith.mulf %186, %185 : vector<32x32xf32>
    %188 = vector.broadcast %182 : vector<1x32xf32> to vector<32x32xf32>
    %189 = arith.subf %188, %187 : vector<32x32xf32>
    %190 = tpu.iota {dimensions = array<i32: 1>} : vector<32x32xi32>
    %cst_74 = arith.constant dense<0x7F800000> : vector<32xf32>
    %191 = vector.multi_reduction <minimumf>, %189, %cst_74 [1] : vector<32x32xf32> to vector<32xf32>
    %192 = vector.shape_cast %191 : vector<32xf32> to vector<32x1xf32>
    %193 = vector.broadcast %192 : vector<32x1xf32> to vector<32x32xf32>
    %194 = arith.cmpf ole, %189, %193 : vector<32x32xf32>
    %c32_i32 = arith.constant 32 : i32
    %195 = vector.broadcast %c32_i32 : i32 to vector<32x32xi32>
    %196 = arith.select %194, %190, %195 : vector<32x32xi1>, vector<32x32xi32>
    %cst_75 = arith.constant dense<2147483647> : vector<32xi32>
    %197 = vector.multi_reduction <minsi>, %196, %cst_75 [1] : vector<32x32xi32> to vector<32xi32>
    %198 = vector.shape_cast %197 : vector<32xi32> to vector<32x1xi32>
    %199 = vector.broadcast %198 : vector<32x1xi32> to vector<32x32xi32>
    %200 = arith.cmpi eq, %190, %199 : vector<32x32xi32>
    %201 = arith.extui %200 : vector<32x32xi1> to vector<32x32xi32>
    %202 = arith.sitofp %201 : vector<32x32xi32> to vector<32x32xf32>
    %c0_76 = arith.constant 0 : index
    %c0_77 = arith.constant 0 : index
    %203 = vector.load %arg25[%c0_76, %c0_77] : memref<32x128xbf16, #tpu.memory_space<vmem>>, vector<32x128xbf16>
    %204 = arith.truncf %202 : vector<32x32xf32> to vector<32x32xbf16>
    %cst_78 = arith.constant dense<0.000000e+00> : vector<32x128xf32>
    %205 = tpu.matmul %204, %203, %cst_78 {dimension_numbers = #tpu.dot_dimension_numbers<[1], [0], [0], [1], [0, 0, 1, 1], [], []>} : vector<32x32xbf16>, vector<32x128xbf16>, vector<32x128xf32> -> vector<32x128xf32>
    %206 = vector.extract_strided_slice %205 {offsets = [0, 0], sizes = [32, 8], strides = [1, 1]} : vector<32x128xf32> to vector<32x8xf32>
    %207 = arith.subf %206, %181 : vector<32x8xf32>
    %208 = arith.mulf %207, %207 : vector<32x8xf32>
    %cst_79 = arith.constant dense<0.000000e+00> : vector<32xf32>
    %209 = vector.multi_reduction <add>, %208, %cst_79 [1] : vector<32x8xf32> to vector<32xf32>
    %210 = vector.shape_cast %209 : vector<32xf32> to vector<32x1xf32>
    %cst_80 = arith.constant dense<0.000000e+00> : vector<1xf32>
    %211 = vector.multi_reduction <add>, %210, %cst_80 [0] : vector<32x1xf32> to vector<1xf32>
    %212 = vector.shape_cast %211 : vector<1xf32> to vector<1x1xf32>
    %cst_81 = arith.constant 3.906250e-03 : f32
    %213 = vector.broadcast %cst_81 : f32 to vector<1x1xf32>
    %214 = arith.mulf %212, %213 : vector<1x1xf32>
    %215 = tpu.iota {dimensions = array<i32: 0>} : vector<32x128xi32>
    %216 = tpu.iota {dimensions = array<i32: 1>} : vector<32x128xi32>
    %c0_i32 = arith.constant 0 : i32
    %217 = vector.broadcast %c0_i32 : i32 to vector<32x128xi32>
    %218 = arith.cmpi eq, %215, %217 : vector<32x128xi32>
    %c127_i32 = arith.constant 127 : i32
    %219 = vector.broadcast %c127_i32 : i32 to vector<32x128xi32>
    %220 = arith.cmpi eq, %216, %219 : vector<32x128xi32>
    %221 = arith.andi %218, %220 : vector<32x128xi1>
    %cst_82 = arith.constant 0.000000e+00 : f32
    %222 = vector.shape_cast %214 : vector<1x1xf32> to vector<1x1xf32>
    %223 = vector.broadcast %222 : vector<1x1xf32> to vector<32x128xf32>
    %224 = vector.broadcast %cst_82 : f32 to vector<32x128xf32>
    %225 = arith.select %221, %223, %224 : vector<32x128xi1>, vector<32x128xf32>
    %226 = arith.addf %205, %225 : vector<32x128xf32>
    %c0_83 = arith.constant 0 : index
    %c0_84 = arith.constant 0 : index
    %227 = vector.load %arg27[%c0_83, %c0_84] : memref<32x128xf32, #tpu.memory_space<vmem>>, vector<32x128xf32>
    tpu.vector_store %arg27[%c0_83, %c0_84], %226 {strides = array<i32>} : memref<32x128xf32, #tpu.memory_space<vmem>>, vector<32x128xf32>,
    return
  }
}

</mosaic_0001>

<bundles_post_ra>
// kernel: score_sde_refiner_forward.1
= control target key start
LH: loop header
LB: loop body
LE: loop exit
PB: predicated region body
PF: predicated region fallthrough
CT: control target
= control target key end

     0   :  { %s2863_s0 = inlined_call_operand.vmem [shape: f32[32,32], index: 0, kind: input, shape index: {}]   ;;  %s2864_s1 = inlined_call_operand.vmem [shape: f32[32,1], index: 1, kind: input, shape index: {}]   ;;  %s2865_s2 = inlined_call_operand.vmem [shape: f32[32,1], index: 2, kind: input, shape index: {}]   ;;  %s2866_s3 = inlined_call_operand.hbm [shape: f32[2,16], index: 3, kind: input, shape index: {}]   ;;  %s2867_s4 = inlined_call_operand.vmem [shape: f32[2,1], index: 4, kind: input, shape index: {}]   ;;  %s2868_s5 = inlined_call_operand.vmem [shape: bf16[32,72], index: 5, kind: input, shape index: {}]   ;;  %s2869_s6 = inlined_call_operand.hbm [shape: f32[3,72], index: 6, kind: input, shape index: {}]   ;;  %s2870_s7 = inlined_call_operand.hbm [shape: f32[2,32], index: 7, kind: input, shape index: {}]   ;;  %s2871_s8 = inlined_call_operand.vmem [shape: bf16[32,72], index: 8, kind: input, shape index: {}]   ;;  %s2872_s9 = inlined_call_operand.vmem [shape: f32[1,72], index: 9, kind: input, shape index: {}]   ;;  %s2873_s10 = inlined_call_operand.vmem [shape: bf16[16,73], index: 10, kind: input, shape index: {}]   ;;  %s2874_s11 = inlined_call_operand.vmem [shape: bf16[32,73], index: 11, kind: input, shape index: {}]   ;;  %s2875_s12 = inlined_call_operand.hbm [shape: bf16[2,32], index: 12, kind: input, shape index: {}]   ;;  %s2876_s13 = inlined_call_operand.vmem [shape: bf16[32,2], index: 13, kind: input, shape index: {}]   ;;  %s2877_s14 = inlined_call_operand.vmem [shape: f32[4,16], index: 14, kind: input, shape index: {}]   ;;  %s2878_s15 = inlined_call_operand.vmem [shape: bf16[72,200], index: 15, kind: input, shape index: {}]   ;;  %s2879_s16 = inlined_call_operand.vmem [shape: f32[2,72], index: 16, kind: input, shape index: {}]   ;;  %s2880_s17 = inlined_call_operand.vmem [shape: bf16[72,24], index: 17, kind: input, shape index: {}]   ;;  %s2881_s18 = inlined_call_operand.vmem [shape: f32[1,8], index: 18, kind: input, shape index: {}]   ;;  %s2882_s19 = inlined_call_operand.hbm [shape: bf16[8,48], index: 19, kind: input, shape index: {}]   ;;  %s2883_s20 = inlined_call_operand.vmem [shape: f32[1,16], index: 20, kind: input, shape index: {}]   ;;  %s2884_s21 = inlined_call_operand.hbm [shape: bf16[16,24], index: 21, kind: input, shape index: {}]   ;;  %s2885_s22 = inlined_call_operand.vmem [shape: f32[1,8], index: 22, kind: input, shape index: {}]   ;;  %s2886_s23 = inlined_call_operand.vmem [shape: bf16[8,32], index: 23, kind: input, shape index: {}]   ;;  %s2887_s24 = inlined_call_operand.hbm [shape: f32[1,32], index: 24, kind: input, shape index: {}]   ;;  %s2888_s25 = inlined_call_operand.hbm [shape: bf16[32,128], index: 25, kind: input, shape index: {}]   ;;  %s2889_s26 = inlined_call_operand.vmem [shape: f32[32,2], index: 26, kind: input, shape index: {}]   ;;  %s2890_s27 = inlined_call_operand.vmem [shape: f32[32,128], index: 27, kind: output, shape index: {}]  }
   0x1   :  { %2898 = sst [smem:[#allocation20_spill]] %s2863_s0 }
   0x2   :  { %2899 = sst [smem:[#allocation21_spill]] %s2864_s1 }
   0x3   :  { %2900 = sst [smem:[#allocation22_spill]] %s2865_s2 }
   0x4   :  { %2901 = sst [smem:[#allocation23_spill]] %s2866_s3 }
   0x5   :  { %2902 = sst [smem:[#allocation24_spill]] %s2867_s4 }
   0x6   :  { %2903 = sst [smem:[#allocation25_spill]] %s2868_s5 }
   0x7   :  { %2904 = sst [smem:[#allocation26_spill]] %s2869_s6 }
   0x8   :  { %2905 = sst [smem:[#allocation27_spill]] %s2870_s7 }
   0x9   :  { %2906 = sst [smem:[#allocation28_spill]] %s2871_s8 }
   0xa   :  { %2907 = sst [smem:[#allocation29_spill]] %s2872_s9 }
   0xb   :  { %2908 = sst [smem:[#allocation30_spill]] %s2873_s10 }
   0xc   :  { %2909 = sst [smem:[#allocation31_spill]] %s2874_s11 }
   0xd   :  { %2910 = sst [smem:[#allocation32_spill]] %s2890_s27 }
   0xe   :  { %32 = vsyncpa [#allocation3], 0 }
   0xf   :  { %33 = vsyncpa [#allocation5], 0 }
  0x10   :  { %34 = vsyncpa [#allocation8], 0 }
  0x11   :  { %35 = vsyncpa [#allocation11], 0  ;;  %s2911_s8 = sld [smem:[#allocation26_spill]] }
  0x17   :  { %s63_s30 = sshll.u32 %s2911_s8, 4  ;;  %s64_s30 = int_to_ptr.hbm [resolvable:$true] %s63_s30 }
  0x18   :  { %36 = vsyncpa [#allocation14], 0  ;;  %s2040_s9 = smov [#allocation4]   ;;  %s93_s10 = sshll.u32 %s2875_s12, 4  ;;  %s94_s10 = int_to_ptr.hbm [resolvable:$true] %s93_s10 }
  0x19   :  { %s65_s5 = sshll.u32 %s2040_s9, 4  ;;  %s2041_s29 = smov [#allocation7]   ;;  %s66_s5 = int_to_ptr.vmem [resolvable:$true] %s65_s5 }
  0x1a   :  { %68 = dma.hbm_to_vmem [thread:$0]  %s64_s30, 64, %s66_s5, [#allocation5]  }
  0x1b   :  { %s95_s1 = sshll.u32 %s2041_s29, 4  ;;  %s128_s2 = sshll.u32 %s2884_s21, 4  ;;  %s96_s1 = int_to_ptr.vmem [resolvable:$true] %s95_s1  ;;  %s129_s2 = int_to_ptr.hbm [resolvable:$true] %s128_s2 }
  0x1c   :  { %98 = dma.hbm_to_vmem [thread:$0]  %s94_s10, 16, %s96_s1, [#allocation8]  }
  0x1d   :  { %s2042_s3 = smov [#allocation10]   ;;  %s2912_s9 = sld [smem:[#allocation23_spill]] }
  0x1e   :  { %s130_s7 = sshll.u32 %s2042_s3, 4  ;;  %s2043_s28 = smov 64   ;;  %s131_s7 = int_to_ptr.vmem [resolvable:$true] %s130_s7 }
  0x1f   :  { %s2044_s12 = smov 4   ;;  %s2045_s30 = smov [#allocation2]  }
  0x20   :  { %136 = dma.hbm_to_vmem [thread:$0]  %s129_s2, 128, %s131_s7, [#allocation11], %s2043_s28, %s2043_s28, %s2044_s12  }
  0x21   :  { %s50_s5 = sshll.u32 %s2045_s30, 4  ;;  %s2913_s29 = sld [smem:[#allocation27_spill]]  ;;  %s51_s5 = int_to_ptr.vmem [resolvable:$true] %s50_s5 }
  0x22   :  { %s116_s11 = sshll.u32 %s2882_s19, 4  ;;  %s2046_s3 = smov [#allocation6]   ;;  %s117_s11 = int_to_ptr.hbm [resolvable:$true] %s116_s11 }
  0x23   :  { %s48_s27 = sshll.u32 %s2912_s9, 4  ;;  %s76_s4 = sshll.u32 %s2046_s3, 4  ;;  %s49_s27 = int_to_ptr.hbm [resolvable:$true] %s48_s27  ;;  %s77_s4 = int_to_ptr.vmem [resolvable:$true] %s76_s4 }
  0x24   :  { %53 = dma.hbm_to_vmem [thread:$0]  %s49_s27, 32, %s51_s5, [#allocation3]  }
  0x25   :  { %s2047_s2 = smov [#allocation9]   ;;  %s146_s30 = sshll.u32 %s2887_s24, 4  ;;  %s147_s30 = int_to_ptr.hbm [resolvable:$true] %s146_s30 }
  0x26   :  { %s118_s7 = sshll.u32 %s2047_s2, 4  ;;  %s156_s5 = sshll.u32 %s2888_s25, 4  ;;  %s119_s7 = int_to_ptr.vmem [resolvable:$true] %s118_s7  ;;  %s157_s5 = int_to_ptr.hbm [resolvable:$true] %s156_s5 }
  0x27   :  { %s74_s10 = sshll.u32 %s2913_s29, 4  ;;  %s2048_s0 = smov [#allocation12]   ;;  %s75_s10 = int_to_ptr.hbm [resolvable:$true] %s74_s10 }
  0x28   :  { %79 = dma.hbm_to_vmem [thread:$0]  %s75_s10, 32, %s77_s4, [#allocation5]  }
  0x29   :  { %121 = dma.hbm_to_vmem [thread:$0]  %s117_s11, 64, %s119_s7, [#allocation8]  }
  0x2a   :  { %s148_s19 = sshll.u32 %s2048_s0, 4  ;;  %s2049_s29 = smov [#allocation13]   ;;  %s149_s19 = int_to_ptr.vmem [resolvable:$true] %s148_s19 }
  0x2b   :  { %151 = dma.hbm_to_vmem [thread:$0]  %s147_s30, 16, %s149_s19, [#allocation11]  }
  0x2c   :  { %s158_s10 = sshll.u32 %s2049_s29, 4  ;;  %s159_s10 = int_to_ptr.vmem [resolvable:$true] %s158_s10 }
  0x2d   :  { %164 = dma.hbm_to_vmem [thread:$0]  %s157_s5, 256, %s159_s10, [#allocation14], %s2043_s28, %s2043_s28, %s2044_s12  }
  0x2e   :  { %2030 = dma.done.wait [#allocation3], 32  }
  0x2f   :  { %2031 = vsyncadd [#allocation3], 4294967264 }
  0x30   :  { %2032 = dma.done.wait [#allocation5], 96  }
  0x31   :  { %2033 = vsyncadd [#allocation5], 4294967200 }
  0x32   :  { %2034 = dma.done.wait [#allocation8], 80  }
  0x33   :  { %2035 = vsyncadd [#allocation8], 4294967216 }
  0x34   :  { %2036 = dma.done.wait [#allocation11], 144  }
  0x35   :  { %2037 = vsyncadd [#allocation11], 4294967152 }
  0x36   :  { %2038 = dma.done.wait [#allocation14], 256  }
  0x37   :  { %2039 = vsyncadd [#allocation14], 4294967040  ;;  %v2050_v0 = vmov 0   ;;  %s2914_s28 = sld [smem:[#allocation24_spill]]  ;;  %vm262_vm0 = vcmask 261120   ;;  %v2280_v18 = vld [vmem:[%s2878_s15 + $0x40] sm:$0xff]  ;;  %v323_v25 = vlaneseq }
  0x38   :  { %1769 = vset.pattern.permute.xlu1 %v2050_v0  ;;  %1768 = vset.pattern.permute.xlu0 %v2050_v0  ;;  %s2915_s6 = sld [smem:[#allocation21_spill]]  ;;  %v694_v19 = vunpack.c.l.b16 %v2280_v18  ;;  %vm721_vm1 = vcmask 1043456   ;;  %v1667_v22 = vld [vmem:[%s2878_s15 + $0x30] sm:$0xf]  ;;  %v1743_v23 = vld [vmem:[%s2878_s15 + $0x34] sm:$0xf0] }
  0x39   :  { %1770 = vset.pattern.permute.xlu2 %v2050_v0  ;;  %s2916_s4 = sld [smem:[#allocation25_spill]]  ;;  %v1668_v24 = vor.u32 %v1743_v23, %v1667_v22  ;;  %v1659_v26 = vld [vmem:[%s2878_s15 + $0x20] sm:$0xf]  ;;  %v1741_v27 = vld [vmem:[%s2878_s15 + $0x24] sm:$0xf0]  ;;  %v2302_v31 = vand.u32 127, %v323_v25 }
  0x3a   :  { %s2917_s30 = sld [smem:[#allocation20_spill]]  ;;  %v704_v20 = vpack.c.b16 %v694_v19, %v694_v19  ;;  %v524_v28 = vld [vmem:[#allocation7] sm:$0x1]  ;;  %v1660_v29 = vor.u32 %v1741_v27, %v1659_v26  ;;  %v2299_v30 = vld [vmem:[%s2877_s14] sm:$0xf]  ;;  %vm714_vm10 = vcmask 588800  }
  0x3b   :  { %s2918_s25 = sld [smem:[#allocation22_spill]]  ;;  %v322_v32 = vld [vmem:[#allocation6] sm:$0x3]  ;;  %v1651_v33 = vld [vmem:[%s2878_s15 + $0x10] sm:$0xf]  ;;  %v473_v35 = vperm.slane %v2299_v30, 0 }
  0x3c   :  { %v723_v21 = vsel %vm721_vm1, %v704_v20, 0  ;;  %v1739_v34 = vld [vmem:[%s2878_s15 + $0x14] sm:$0xf0]  ;;  %vm325_vm2 = vcmp.lt.s32.totalorder %v2302_v31, 16  ;;  %v2313_v37 = vperm.slane %v322_v32, 0  ;;  %v475_v39 = vperm.slane %v2299_v30, 1 }
  0x3d   :  { %v213_v1 = vld [vmem:[%s2914_s28] sm:$0x3]  ;;  %v1652_v36 = vor.u32 %v1739_v34, %v1651_v33  ;;  %v2316_v42 = vperm.slane %v322_v32, 1  ;;  %v1737_v44 = vld [vmem:[%s2878_s15 + $0x4] sm:$0xf0]  ;;  %s2919_s27 = sld [smem:[#allocation28_spill]] }
  0x3e   :  { %v205_v2 = vld [vmem:[%s2915_s6 + $0x8] sm:$0xff]  ;;  %470 = vperm.xlu0 %1768, %v213_v1   ;;  %v204_v12 = vld [vmem:[%s2915_s6] sm:$0xff]  ;;  %v207_v14 = vld [vmem:[%s2915_s6 + $0x18] sm:$0xff]  ;;  %v497_v20 = vperm.slane %v2299_v30, 2  ;;  %vm499_vm11 = vcmask 123904   ;;  %s2925_s29 = sld [smem:[#allocation30_spill]] }
  0x3f   :  { %v1728_v3 = vld [vmem:[%s2916_s4 + $0x8] sm:$0xff]  ;;  %232 = vperm.xlu1 %1769, %v205_v2   ;;  %v1727_v4 = vld [vmem:[%s2916_s4] sm:$0xff]  ;;  %v206_v15 = vld [vmem:[%s2915_s6 + $0x10] sm:$0xff]  ;;  %s2052_s5 = smov 120   ;;  %s2053_s6 = smov 112  }
  0x40   :  { %275 = vmatpush.bf16.msra.mxu0 %v1728_v3  ;;  %v200_v5 = vld [vmem:[%s2917_s30] sm:$0xff]  ;;  %v201_v6 = vld [vmem:[%s2917_s30 + $0x8] sm:$0xff]  ;;  %v202_v7 = vld [vmem:[%s2917_s30 + $0x10] sm:$0xff]  ;;  %s2929_s3 = sld [smem:[#allocation32_spill]] }
  0x41   :  { %v203_v8 = vld [vmem:[%s2917_s30 + $0x18] sm:$0xff]  ;;  %v209_v9 = vld [vmem:[%s2918_s25 + $0x8] sm:$0xff]  ;;  %v208_v10 = vld [vmem:[%s2918_s25] sm:$0xff]  ;;  %v223_v13 = vpack.c.bf16 %v201_v6, %v200_v5 }
  0x42   :  { %v224_v11 = vpack.c.bf16 %v203_v8, %v202_v7  ;;  %295 = vperm.xlu2 %1770, %v209_v9   ;;  %v211_v16 = vld [vmem:[%s2918_s25 + $0x18] sm:$0xff]  ;;  %v210_v17 = vld [vmem:[%s2918_s25 + $0x10] sm:$0xff]  ;;  %v1643_v43 = vld [vmem:[%s2878_s15] sm:$0xf]  ;;  %v695_v9 = vunpack.c.h.b16 %v2280_v18 }
  0x43   :  { %v1644_v47 = vor.u32 %v1737_v44, %v1643_v43  ;;  %v1730_v53 = vld [vmem:[%s2919_s27 + $0x8] sm:$0xff]  ;;  %v1729_v58 = vld [vmem:[%s2919_s27] sm:$0xff]  ;;  %s2924_s27 = sld [smem:[#allocation31_spill]] }
  0x44   :  { %276 = vmatpush.bf16.msra.mxu0 %v1727_v4  ;;  %534 = vmatpush.bf16.msra.mxu3 %v224_v11  ;;  %v218_v2 = vld [vmem:[#allocation4] sm:$0x7] }
  0x45   :  { %454 = vmatpush.bf16.msra.mxu1 %v1730_v53  ;;  %v2354_v5 = vperm.slane %v218_v2, 0  ;;  %v2356_v6 = vperm.slane %v218_v2, 1 }
  0x46   :  { %227 = vperm.xlu0 %1768, %v204_v12  }
  0x47   :  { %290 = vperm.xlu1 %1769, %v208_v10   ;;  %1598 = vmatmul.msk.bf16.vlgmr.msra.gmra.mxu0 %vm262_vm0, %v223_v13 }
  0x48   :  { %535 = vmatpush.bf16.msra.mxu3 %v223_v13  ;;  %731 = vmatpush.bf16.msrb.mxu0 %v723_v21  ;;  %v2361_v13 = vperm.slane %v218_v2, 2 }
  0x49   :  { %455 = vmatpush.bf16.msra.mxu1 %v1729_v58 }
  0x4b   :  { %1616 = vmatmul.msk.bf16.vlgmr.msra.gmra.mxu3 %vm262_vm0, %v524_v28 }
  0x4c   :  { %732 = vmatpush.bf16.msrb.mxu0 %v1668_v24 }
  0x4e   :  { %237 = vperm.xlu0 %1768, %v206_v15  }
  0x4f   :  { %242 = vperm.xlu1 %1769, %v207_v14  }
  0x50   :  { %733 = vmatpush.bf16.msrb.mxu0 %v1660_v29  ;;  %v705_v29 = vpack.c.b16 %v695_v9, %v695_v9 }
  0x54   :  { %734 = vmatpush.bf16.msrb.mxu0 %v1652_v36 }
  0x56   :  { %300 = vperm.xlu0 %1768, %v210_v17  }
  0x57   :  { %305 = vperm.xlu1 %1769, %v211_v16   ;;  %1599 = vmatmul.msk.bf16.gmra.mxu0 %vm262_vm0, %v224_v11 }
  0x58   :  { %735 = vmatpush.bf16.msrb.mxu0 %v1644_v47 }
  0x9c   :  { %v296_v38 = vpop.permute.xlu2 %295 }
  0x9d   :  { %v310_v12 = vmul.f32 %v2356_v6, %v296_v38 }
  0xb0   :  { %v471_v40 = vpop.permute.xlu0 %470 }
  0xb1   :  { %v233_v41 = vpop.permute.xlu1 %232  ;;  %v474_v45 = vmul.f32 %v473_v35, %v471_v40 }
  0xb2   :  { %v327_v46 = vsel %vm325_vm2, %v233_v41, %v296_v38  ;;  %v247_v11 = vmul.f32 %v2354_v5, %v233_v41 }
  0xb3   :  { %v332_v48 = vmul.f32 %v2313_v37, %v327_v46  ;;  %v2327_v49 = vadd.f32 %v475_v39, %v474_v45 }
  0xb5   :  { %v2330_v50 = vadd.f32 %v2316_v42, %v332_v48  ;;  %v1614_v51 = vmul.f32 -1.442695, %v2327_v49  ;;  %v726_v48 = vsel %vm721_vm1, %v705_v29, 0 }
  0xb6   :  { %750 = vmatpush.bf16.msrb.mxu1 %v726_v48 }
  0xb7   :  { %v1601_v52 = vmul.f32 -1.442695, %v2330_v50  ;;  %1782 = vpow2.f32 %v1614_v51 }
  0xb8   :  { %v228_v55 = vpop.permute.xlu0 %227 }
  0xb9   :  { %1784 = vpow2.f32 %v1601_v52  ;;  %v291_v54 = vpop.permute.xlu1 %290  ;;  %v246_v17 = vmul.f32 %v2354_v5, %v228_v55 }
  0xba   :  { %v326_v56 = vsel %vm325_vm2, %v228_v55, %v291_v54  ;;  %v309_v16 = vmul.f32 %v2356_v6, %v291_v54  ;;  %v1669_v55 = vld [vmem:[%s2878_s15 + $0x38] sm:$0xf0] }
  0xbb   :  { %v331_v57 = vmul.f32 %v2313_v37, %v326_v56 }
  0xbd   :  { %v2344_v59 = vadd.f32 %v2316_v42, %v331_v57  ;;  %v1783_v60 = vpop.eup %1782 }
  0xbe   :  { %v480_v62 = vadd.f32 1.0, %v1783_v60  ;;  %v1740_v60 = vld [vmem:[%s2878_s15 + $0x24] sm:$0xf] }
  0xbf   :  { %v1785_v61 = vpop.eup %1784  ;;  %v1600_v63 = vmul.f32 -1.442695, %v2344_v59 }
  0xc0   :  { %v2347_v1 = vadd.f32 1.0, %v1785_v61  ;;  %1786 = vrcp.f32 %v480_v62  ;;  %v2351_v4 = vpop.permute.xlu0 %237  ;;  %v490_v8 = vand.u32 2147483647, %v480_v62  ;;  %v492_v14 = vand.u32 2147483648, %v480_v62  ;;  %v1661_v61 = vld [vmem:[%s2878_s15 + $0x28] sm:$0xf0] }
  0xc1   :  { %v2349_v3 = vpop.permute.xlu1 %242  ;;  %vm486_vm3 = vweird.f32 %v480_v62 }
  0xc2   :  { %1788 = vrcp.f32 %v2347_v1  ;;  %vm2372_vm4 = vcmp.eq.f32.partialorder %v490_v8, 8.507059e+37  ;;  %vm376_vm5 = vweird.f32 %v2347_v1  ;;  %v493_v35 = vor.u32 1.1754944e-38, %v492_v14 }
  0xc3   :  { %1790 = vpow2.f32 %v1600_v63  ;;  %v380_v38 = vand.u32 2147483647, %v2347_v1  ;;  %v382_v39 = vand.u32 2147483648, %v2347_v1 }
  0xc4   :  { %v278_v7 = vpop.f32.mrf.mxu0 }
  0xc5   :  { %v279_v27 = vadd.f32 %v278_v7, %v246_v17  ;;  %v383_v14 = vor.u32 1.1754944e-38, %v382_v39  ;;  %vm381_vm12 = vcmp.eq.f32.partialorder %v380_v38, 8.507059e+37  ;;  %v249_v38 = vmul.f32 %v2354_v5, %v2349_v3 }
  0xc6   :  { %v1787_v10 = vpop.eup %1786 }
  0xc7   :  { %v482_v19 = vmul.f32 %v1787_v10, %v480_v62  ;;  %vm487_vm6 = vweird.f32 %v1787_v10  ;;  %v313_v45 = vadd.f32 %v309_v16, %v279_v27  ;;  %v1653_v16 = vld [vmem:[%s2878_s15 + $0x18] sm:$0xf0] }
  0xc8   :  { %v2363_v15 = vpop.eup %1788  ;;  %v2370_v18 = vpop.permute.xlu0 %300  ;;  %vm488_vm8 = vmor %vm486_vm3, %vm487_vm6 }
  0xc9   :  { %v1791_v21 = vpop.eup %1790  ;;  %v2368_v22 = vpop.permute.xlu1 %305  ;;  %v372_v24 = vmul.f32 %v2363_v15, %v2347_v1  ;;  %v328_v33 = vsel %vm325_vm2, %v2351_v4, %v2370_v18  ;;  %v483_v34 = vsub.f32 1.0, %v482_v19  ;;  %vm377_vm7 = vweird.f32 %v2363_v15  ;;  %v1738_v1 = vld [vmem:[%s2878_s15 + $0x14] sm:$0xf] }
  0xca   :  { %v2379_v26 = vadd.f32 1.0, %v1791_v21  ;;  %v329_v28 = vsel %vm325_vm2, %v2349_v3, %v2368_v22  ;;  %v333_v36 = vmul.f32 %v2313_v37, %v328_v33  ;;  %v2420_v63 = vadd.f32 %v2361_v13, %v313_v45  ;;  %vm2431_vm9 = vmor %vm376_vm5, %vm377_vm7 }
  0xcb   :  { %v334_v32 = vmul.f32 %v2313_v37, %v329_v28  ;;  %v484_v43 = vmul.f32 %v1787_v10, %v483_v34  ;;  %v373_v44 = vsub.f32 1.0, %v372_v24  ;;  %v248_v33 = vmul.f32 %v2354_v5, %v2351_v4 }
  0xcc   :  { %1792 = vrcp.f32 %v2379_v26  ;;  %v280_v41 = vpop.f32.mrf.mxu0  ;;  %v2398_v46 = vadd.f32 %v2316_v42, %v333_v36  ;;  %v365_v23 = vand.u32 2147483647, %v2379_v26  ;;  %v367_v24 = vand.u32 2147483648, %v2379_v26  ;;  %v1645_v36 = vld [vmem:[%s2878_s15 + $0x8] sm:$0xf0] }
  0xcd   :  { %v2395_v40 = vadd.f32 %v2316_v42, %v334_v32  ;;  %v281_v47 = vadd.f32 %v280_v41, %v247_v11  ;;  %v485_v51 = vadd.f32 %v1787_v10, %v484_v43  ;;  %v374_v52 = vmul.f32 %v2363_v15, %v373_v44  ;;  %v1742_v42 = vld [vmem:[%s2878_s15 + $0x34] sm:$0xf] }
  0xce   :  { %v1602_v53 = vmul.f32 -1.442695, %v2398_v46  ;;  %v1672_v58 = vor.u32 %v1742_v42, %v1669_v55  ;;  %v1664_v11 = vor.u32 %v1740_v60, %v1661_v61  ;;  %v1656_v32 = vor.u32 %v1738_v1, %v1653_v16 }
  0xcf   :  { %v1603_v37 = vmul.f32 -1.442695, %v2395_v40  ;;  %v314_v54 = vadd.f32 %v310_v12, %v281_v47  ;;  %v489_v56 = vsel %vm488_vm8, %v1787_v10, %v485_v51  ;;  %v375_v57 = vadd.f32 %v2363_v15, %v374_v52 }
  0xd0   :  { %v494_v7 = vsel %vm2372_vm4, %v493_v35, %v489_v56  ;;  %751 = vmatpush.bf16.msrb.mxu1 %v1672_v58  ;;  %v1736_v35 = vld [vmem:[%s2878_s15 + $0x4] sm:$0xf]  ;;  %vm361_vm14 = vweird.f32 %v2379_v26  ;;  %vm366_vm2 = vcmp.eq.f32.partialorder %v365_v23, 8.507059e+37  ;;  %v368_v43 = vor.u32 1.1754944e-38, %v367_v24  ;;  %v2488_v23 = vld [vmem:[%s2889_s26 + $0x8] sm:$0xff] }
  0xd1   :  { %1794 = vpow2.f32 %v1603_v37  ;;  %v2423_v2 = vadd.f32 %v2361_v13, %v314_v54  ;;  %v496_v9 = vmul.f32 %v494_v7, %v2327_v49  ;;  %v379_v21 = vsel %vm2431_vm9, %v2363_v15, %v375_v57  ;;  %v1733_v24 = vld [vmem:[%s2924_s27 + $0x8] sm:$0xff]  ;;  %973 = vperm.xlu1 %1769, %v2488_v23  }
  0xd2   :  { %v1793_v62 = vpop.eup %1792  ;;  %1796 = vpow2.f32 %v1602_v53  ;;  %v384_v15 = vsel %vm381_vm12, %v383_v14, %v379_v21  ;;  %v1648_v47 = vor.u32 %v1736_v35, %v1645_v36  ;;  %v312_v48 = vmul.f32 %v2356_v6, %v2368_v22  ;;  %570 = vmatpush.bf16.msrb.mxu3 %v1733_v24 }
  0xd3   :  { %v357_v10 = vmul.f32 %v1793_v62, %v2379_v26  ;;  %v2439_v12 = vpack.c.bf16 %v2423_v2, %v2420_v63  ;;  %v498_v49 = vmul.f32 %v497_v20, %v496_v9  ;;  %vm362_vm13 = vweird.f32 %v1793_v62 }
  0xd4   :  { %v283_v17 = vpop.f32.mrf.mxu0  ;;  %752 = vmatpush.bf16.msrb.mxu1 %v1664_v11  ;;  %vm363_vm15 = vmor %vm361_vm14, %vm362_vm13  ;;  %v417_v45 = vmul.f32 %v384_v15, %v2330_v50  ;;  %v311_v3 = vmul.f32 %v2356_v6, %v2370_v18  ;;  %vm583_vm12 = vcmask 130048  }
  0xd5   :  { %v358_v19 = vsub.f32 1.0, %v357_v10  ;;  %1673 = vmatmul.msk.bf16.vlgmr.msrb.gmra.mxu0 %vm714_vm10, %v2439_v12  ;;  %v500_v28 = vsel %vm499_vm11, %v498_v49, 0.0  ;;  %v284_v4 = vadd.f32 %v283_v17, %v248_v33 }
  0xd6   :  { %501 = vadd.xlane.f32.xlu2 %v500_v28  ;;  %v212_v28 = vld [vmem:[#allocation2] sm:$0x3] }
  0xd7   :  { %v1795_v27 = vpop.eup %1794  ;;  %v359_v29 = vmul.f32 %v1793_v62, %v358_v19  ;;  %v315_v51 = vadd.f32 %v311_v3, %v284_v4  ;;  %v2509_v3 = vld [vmem:[%s2889_s26] sm:$0xff] }
  0xd8   :  { %v1797_v20 = vpop.eup %1796  ;;  %v355_v34 = vadd.f32 1.0, %v1795_v27  ;;  %753 = vmatpush.bf16.msrb.mxu1 %v1656_v32  ;;  %v537_v27 = vpop.f32.mrf.mxu3  ;;  %v543_v32 = vpack.c.bf16 %v212_v28, %v212_v28 }
  0xd9   :  { %v354_v39 = vadd.f32 1.0, %v1797_v20  ;;  %v360_v41 = vadd.f32 %v1793_v62, %v359_v29  ;;  %v2474_v56 = vadd.f32 %v2361_v13, %v315_v51  ;;  %v548_v29 = vpack.c.bf16 %v537_v27, %v537_v27 }
  0xda   :  { %1798 = vrcp.f32 %v355_v34  ;;  %v412_v18 = vand.u32 2147483648, %v355_v34  ;;  %vm406_vm3 = vweird.f32 %v355_v34  ;;  %v503_v20 = vperm.slane %v2299_v30, 3 }
  0xdb   :  { %1800 = vrcp.f32 %v354_v39  ;;  %v364_v44 = vsel %vm363_vm15, %v1793_v62, %v360_v41  ;;  %v397_v61 = vand.u32 2147483648, %v354_v39  ;;  %v395_v8 = vand.u32 2147483647, %v354_v39 }
  0xdc   :  { %v369_v5 = vsel %vm366_vm2, %v368_v43, %v364_v44  ;;  %v285_v26 = vpop.f32.mrf.mxu0  ;;  %754 = vmatpush.bf16.msrb.mxu1 %v1648_v47  ;;  %vm391_vm8 = vweird.f32 %v354_v39 }
  0xdd   :  { %v416_v37 = vmul.f32 %v369_v5, %v2344_v59  ;;  %v286_v52 = vadd.f32 %v285_v26, %v249_v38  ;;  %v410_v59 = vand.u32 2147483647, %v355_v34  ;;  %v398_v11 = vor.u32 1.1754944e-38, %v397_v61 }
  0xde   :  { %vm396_vm11 = vcmp.eq.f32.partialorder %v395_v8, 8.507059e+37 }
  0xdf   :  { %v424_v53 = vpack.c.bf16 %v417_v45, %v416_v37  ;;  %v316_v42 = vadd.f32 %v312_v48, %v286_v52  ;;  %vm411_vm7 = vcmp.eq.f32.partialorder %v410_v59, 8.507059e+37 }
  0xe0   :  { %v1799_v54 = vpop.eup %1798 }
  0xe1   :  { %v1801_v55 = vpop.eup %1800  ;;  %1612 = vmatmul.msk.bf16.vlgmr.msra.gmra.mxu1 %vm262_vm0, %v424_v53  ;;  %v402_v50 = vmul.f32 %v1799_v54, %v355_v34  ;;  %v2477_v22 = vadd.f32 %v2361_v13, %v316_v42  ;;  %vm407_vm4 = vweird.f32 %v1799_v54  ;;  %v413_v13 = vor.u32 1.1754944e-38, %v412_v18  ;;  %v1735_v18 = vld [vmem:[%s2876_s13 + $0x8] sm:$0xff] }
  0xe2   :  { %v387_v6 = vmul.f32 %v1801_v55, %v354_v39  ;;  %vm392_vm5 = vweird.f32 %v1801_v55  ;;  %vm408_vm6 = vmor %vm406_vm3, %vm407_vm4  ;;  %vm600_vm3 = vcmp.eq.s32.totalorder %v2302_v31, 72  ;;  %vm630_vm4 = vcmask 1040384  }
  0xe3   :  { %v403_v57 = vsub.f32 1.0, %v402_v50  ;;  %v668_v58 = vpack.c.bf16 %v2477_v22, %v2474_v56  ;;  %vm393_vm9 = vmor %vm391_vm8, %vm392_vm5  ;;  %vm623_vm5 = vcmask 15360  }
  0xe4   :  { %v388_v60 = vsub.f32 1.0, %v387_v6  ;;  %v1734_v6 = vld [vmem:[%s2876_s13] sm:$0xff] }
  0xe5   :  { %v404_v62 = vmul.f32 %v1799_v54, %v403_v57  ;;  %1674 = vmatmul.msk.bf16.gmra.mxu0 %vm714_vm10, %v668_v58 }
  0xe6   :  { %v389_v7 = vmul.f32 %v1801_v55, %v388_v60 }
  0xe7   :  { %v405_v9 = vadd.f32 %v1799_v54, %v404_v62  ;;  %v657_v62 = vld [vmem:[%s2879_s16] sm:$0x3] }
  0xe8   :  { %v390_v10 = vadd.f32 %v1801_v55, %v389_v7  ;;  %v775_v8 = vperm.slane %v657_v62, 1 }
  0xe9   :  { %v409_v14 = vsel %vm408_vm6, %v1799_v54, %v405_v9 }
  0xea   :  { %v394_v1 = vsel %vm393_vm9, %v1801_v55, %v390_v10  ;;  %v414_v16 = vsel %vm411_vm7, %v413_v13, %v409_v14  ;;  %v872_v10 = vld [vmem:[%s2880_s17 + $0x20] sm:$0xf] }
  0xeb   :  { %v399_v17 = vsel %vm396_vm11, %v398_v11, %v394_v1  ;;  %v419_v49 = vmul.f32 %v414_v16, %v2395_v40  ;;  %v1732_v40 = vld [vmem:[%s2924_s27] sm:$0xff]  ;;  %v892_v14 = vunpack.c.l.b16 %v872_v10 }
  0xec   :  { %v418_v19 = vmul.f32 %v399_v17, %v2398_v46  ;;  %v1731_v46 = vld [vmem:[%s2925_s29] sm:$0xff]  ;;  %571 = vmatpush.bf16.msrb.mxu3 %v1732_v40  ;;  %v1746_v40 = vld [vmem:[%s2880_s17 + $0x10] sm:$0xff] }
  0xed   :  { %594 = vmatpush.bf16.msra.mxu2 %v1731_v46  ;;  %v897_v17 = vpack.c.b16 %v892_v14, %v892_v14 }
  0xee   :  { %v425_v21 = vpack.c.bf16 %v419_v49, %v418_v19  ;;  %v1747_v19 = vld [vmem:[%s2880_s17 + $0x18] sm:$0xff] }
  0xef   :  { %1625 = vmatmul.msk.bf16.vlgmr.msrb.gmra.mxu3 %vm262_vm0, %v548_v29  ;;  %v909_v49 = vsel %vm721_vm1, %v897_v17, 0 }
  0xf0   :  { %1630 = vmatmul.msk.bf16.vlgmr.msra.gmra.mxu2 %vm583_vm12, %v543_v32 }
  0xf1   :  { %1613 = vmatmul.msk.bf16.gmra.mxu1 %vm262_vm0, %v425_v21  ;;  %914 = vmatpush.bf16.msrb.mxu2 %v909_v49 }
  0xf5   :  { %915 = vmatpush.bf16.msrb.mxu2 %v1747_v19 }
  0xf9   :  { %916 = vmatpush.bf16.msrb.mxu2 %v1746_v40 }
 0x101   :  { %1675 = vmatmul.msk.bf16.vlgmr.msrb.gmra.mxu1 %vm714_vm10, %v2439_v12  ;;  %v539_v12 = vpop.f32.mrf.mxu3 }
 0x102   :  { %v1745_v12 = vld [vmem:[%s2880_s17 + $0x8] sm:$0xff] }
 0x103   :  { %917 = vmatpush.bf16.msrb.mxu2 %v1745_v12 }
 0x111   :  { %1676 = vmatmul.msk.bf16.gmra.mxu1 %vm714_vm10, %v668_v58 }
 0x149   :  { %v502_v33 = vpop.xlane.xlu2 %501 }
 0x14a   :  { %v504_v34 = vadd.f32 %v503_v20, %v502_v33 }
 0x14c   :  { %v1615_v15 = vmul.f32 -1.442695, %v504_v34  ;;  %v1744_v34 = vld [vmem:[%s2880_s17] sm:$0xff]  ;;  %s2926_s17 = sld [smem:[#allocation29_spill]] }
 0x14d   :  { %918 = vmatpush.bf16.msrb.mxu2 %v1744_v34 }
 0x14e   :  { %1802 = vpow2.f32 %v1615_v15 }
 0x154   :  { %v1803_v35 = vpop.eup %1802 }
 0x155   :  { %v508_v36 = vadd.f32 1.0, %v1803_v35 }
 0x157   :  { %1804 = vrcp.f32 %v508_v36  ;;  %v520_v4 = vand.u32 2147483648, %v508_v36  ;;  %v518_v44 = vand.u32 2147483647, %v508_v36  ;;  %vm514_vm14 = vweird.f32 %v508_v36 }
 0x159   :  { %v521_v47 = vor.u32 1.1754944e-38, %v520_v4  ;;  %vm519_vm2 = vcmp.eq.f32.partialorder %v518_v44, 8.507059e+37 }
 0x15d   :  { %v1805_v38 = vpop.eup %1804 }
 0x15e   :  { %v510_v39 = vmul.f32 %v1805_v38, %v508_v36  ;;  %vm515_vm13 = vweird.f32 %v1805_v38  ;;  %v457_v57 = vpop.f32.mrf.mxu1 }
 0x15f   :  { %vm516_vm15 = vmor %vm514_vm14, %vm515_vm13 }
 0x160   :  { %v511_v41 = vsub.f32 1.0, %v510_v39  ;;  %v737_v39 = vpop.f32.mrf.mxu0 }
 0x162   :  { %v512_v43 = vmul.f32 %v1805_v38, %v511_v41 }
 0x164   :  { %v513_v45 = vadd.f32 %v1805_v38, %v512_v43 }
 0x166   :  { %v517_v48 = vsel %vm516_vm15, %v1805_v38, %v513_v45  ;;  %v2519_v59 = vpop.f32.mrf.mxu1 }
 0x167   :  { %v522_v30 = vsel %vm519_vm2, %v521_v47, %v517_v48  ;;  %v2559_v47 = vld [vmem:[%s2926_s17] ss:$0 sm:$0xff] }
 0x168   :  { %603 = vperm.xlu0 %1768, %v522_v30  }
 0x16e   :  { %v2521_v58 = vpop.f32.mrf.mxu1 }
 0x170   :  { %968 = vperm.xlu0 %1768, %v2509_v3  }
 0x172   :  { %v573_v5 = vpop.f32.mrf.mxu3 }
 0x173   :  { %v596_v26 = vpop.f32.mrf.mxu2 }
 0x174   :  { %v597_v52 = vadd.f32 %v596_v26, %v573_v5  ;;  %v2562_v5 = vperm.slane %v657_v62, 0  ;;  %v460_v62 = vadd.f32 %v2559_v47, %v2519_v59 }
 0x176   :  { %v2523_v60 = vpop.f32.mrf.mxu1 }
 0x17a   :  { %v575_v37 = vpop.f32.mrf.mxu3 }
 0x17b   :  { %v598_v51 = vpop.f32.mrf.mxu2  ;;  %v458_v37 = vadd.f32 %v2559_v47, %v457_v57 }
 0x17e   :  { %v756_v61 = vpop.f32.mrf.mxu1 }
 0x17f   :  { %v776_v13 = vadd.f32 %v775_v8, %v756_v61 }
 0x181   :  { %v1677_v11 = vmul.f32 -1.442695, %v776_v13 }
 0x183   :  { %1806 = vpow2.f32 %v1677_v11 }
 0x186   :  { %v758_v7 = vpop.f32.mrf.mxu1 }
 0x187   :  { %v777_v9 = vadd.f32 %v775_v8, %v758_v7 }
 0x189   :  { %v1678_v16 = vmul.f32 -1.442695, %v777_v9  ;;  %v1807_v21 = vpop.eup %1806 }
 0x18a   :  { %v2538_v28 = vadd.f32 1.0, %v1807_v21 }
 0x18b   :  { %1808 = vpow2.f32 %v1678_v16 }
 0x18c   :  { %1810 = vrcp.f32 %v2538_v28  ;;  %vm801_vm7 = vweird.f32 %v2538_v28 }
 0x18e   :  { %v761_v1 = vpop.f32.mrf.mxu1 }
 0x18f   :  { %v778_v27 = vadd.f32 %v775_v8, %v761_v1 }
 0x191   :  { %v1809_v46 = vpop.eup %1808  ;;  %v1679_v20 = vmul.f32 -1.442695, %v778_v27 }
 0x192   :  { %v2540_v32 = vadd.f32 1.0, %v1809_v46  ;;  %v1811_v15 = vpop.eup %1810 }
 0x193   :  { %v797_v38 = vmul.f32 %v1811_v15, %v2538_v28  ;;  %vm802_vm6 = vweird.f32 %v1811_v15 }
 0x194   :  { %1812 = vrcp.f32 %v2540_v32  ;;  %vm2584_vm9 = vmor %vm801_vm7, %vm802_vm6  ;;  %vm816_vm11 = vweird.f32 %v2540_v32  ;;  %v820_v9 = vand.u32 2147483647, %v2540_v32 }
 0x195   :  { %1814 = vpow2.f32 %v1679_v20  ;;  %v798_v44 = vsub.f32 1.0, %v797_v38 }
 0x196   :  { %v763_v24 = vpop.f32.mrf.mxu1  ;;  %vm821_vm15 = vcmp.eq.f32.partialorder %v820_v9, 8.507059e+37  ;;  %v1038_v9 = vld [vmem:[#allocation9] sm:$0xf] }
 0x197   :  { %v779_v29 = vadd.f32 %v775_v8, %v763_v24  ;;  %v799_v30 = vmul.f32 %v1811_v15, %v798_v44  ;;  %v822_v8 = vand.u32 2147483648, %v2540_v32 }
 0x199   :  { %v1680_v33 = vmul.f32 -1.442695, %v779_v29  ;;  %v823_v49 = vor.u32 1.1754944e-38, %v822_v8 }
 0x19a   :  { %v1813_v35 = vpop.eup %1812 }
 0x19b   :  { %1816 = vpow2.f32 %v1680_v33  ;;  %v1815_v36 = vpop.eup %1814  ;;  %v812_v4 = vmul.f32 %v1813_v35, %v2540_v32  ;;  %vm817_vm8 = vweird.f32 %v1813_v35  ;;  %v463_v33 = vadd.f32 %v2559_v47, %v2521_v58 }
 0x19c   :  { %v2552_v43 = vadd.f32 1.0, %v1815_v36  ;;  %vm818_vm13 = vmor %vm816_vm11, %vm817_vm8 }
 0x19d   :  { %v813_v48 = vsub.f32 1.0, %v812_v4 }
 0x19e   :  { %1818 = vrcp.f32 %v2552_v43 }
 0x19f   :  { %v814_v51 = vmul.f32 %v1813_v35, %v813_v48 }
 0x1a1   :  { %v1817_v41 = vpop.eup %1816  ;;  %v815_v57 = vadd.f32 %v1813_v35, %v814_v51 }
 0x1a2   :  { %v2554_v45 = vadd.f32 1.0, %v1817_v41 }
 0x1a3   :  { %v819_v16 = vsel %vm818_vm13, %v1813_v35, %v815_v57  ;;  %v2638_v57 = vshrl.u32 %v323_v25, 7  ;;  %v216_v25 = vld [vmem:[%s2889_s26 + $0x10] sm:$0xff]  ;;  %vm1041_vm13 = vcmask 64512  }
 0x1a4   :  { %1820 = vrcp.f32 %v2554_v45  ;;  %v824_v46 = vsel %vm821_vm15, %v823_v49, %v819_v16  ;;  %v852_v41 = vand.u32 2147483648, %v2554_v45  ;;  %vm846_vm6 = vweird.f32 %v2554_v45 }
 0x1a5   :  { %v850_v48 = vand.u32 2147483647, %v2554_v45  ;;  %vm936_vm11 = vcmp.lt.s32.totalorder %v2638_v57, 1 }
 0x1da   :  { %v604_v53 = vpop.permute.xlu0 %603 }
 0x1db   :  { %v606_v54 = vsel %vm600_vm3, %v604_v53, 0.0  ;;  %vm831_vm3 = vweird.f32 %v2552_v43 }
 0x1dc   :  { %v607_v42 = vadd.f32 %v606_v54, %v597_v52  ;;  %v739_v52 = vpop.f32.mrf.mxu0  ;;  %v800_v54 = vadd.f32 %v1811_v15, %v799_v30 }
 0x1dd   :  { %v768_v59 = vadd.f32 %v2562_v5, %v739_v52  ;;  %v853_v52 = vor.u32 1.1754944e-38, %v852_v41 }
 0x1de   :  { %v612_v55 = vpack.c.bf16 %v607_v42, %v607_v42  ;;  %v2569_v42 = vpop.eup %1818 }
 0x1df   :  { %v2579_v61 = vpop.eup %1820  ;;  %v827_v13 = vmul.f32 %v2569_v42, %v2552_v43  ;;  %vm832_vm2 = vweird.f32 %v2569_v42 }
 0x1e0   :  { %v632_v50 = vsel %vm630_vm4, %v612_v55, 0  ;;  %v767_v55 = vadd.f32 %v2562_v5, %v737_v39  ;;  %v842_v14 = vmul.f32 %v2579_v61, %v2554_v45  ;;  %vm847_vm4 = vweird.f32 %v2579_v61 }
 0x1e1   :  { %641 = vmatpush.bf16.msra.mxu3 %v632_v50  ;;  %v807_v50 = vand.u32 2147483648, %v2538_v28  ;;  %v828_v19 = vsub.f32 1.0, %v827_v13  ;;  %v465_v39 = vadd.f32 %v2559_v47, %v2523_v60  ;;  %vm848_vm7 = vmor %vm846_vm6, %vm847_vm4 }
 0x1e2   :  { %v843_v27 = vsub.f32 1.0, %v842_v14 }
 0x1e3   :  { %v808_v10 = vor.u32 1.1754944e-38, %v807_v50  ;;  %v829_v12 = vmul.f32 %v2569_v42, %v828_v19 }
 0x1e4   :  { %1639 = vmatmul.msk.bf16.vlgmr.msra.gmra.mxu3 %vm623_vm5, %v1734_v6  ;;  %v2051_v6 = vmov 1   ;;  %v742_v40 = vpop.f32.mrf.mxu0 }
 0x1e5   :  { %1771 = vset.pattern.permute.xlu1 %v2051_v6  ;;  %1772 = vset.pattern.permute.xlu0 %v2051_v6  ;;  %v830_v36 = vadd.f32 %v2569_v42, %v829_v12 }
 0x1e6   :  { %1007 = vperm.xlu1 %1771, %v2509_v3   ;;  %1011 = vperm.xlu0 %1772, %v2488_v23   ;;  %v804_v23 = vsel %vm2584_vm9, %v1811_v15, %v800_v54  ;;  %v844_v15 = vmul.f32 %v2579_v61, %v843_v27  ;;  %vm851_vm9 = vcmp.eq.f32.partialorder %v850_v48, 8.507059e+37 }
 0x1e8   :  { %v845_v58 = vadd.f32 %v2579_v61, %v844_v15 }
 0x1ea   :  { %v849_v60 = vsel %vm848_vm7, %v2579_v61, %v845_v58  ;;  %v217_v61 = vld [vmem:[%s2889_s26 + $0x18] sm:$0xff] }
 0x1ec   :  { %v744_v38 = vpop.f32.mrf.mxu0 }
 0x1ee   :  { %1773 = vset.pattern.permute.xlu1 %v2050_v0  ;;  %v769_v0 = vadd.f32 %v2562_v5, %v742_v40 }
 0x1f4   :  { %1640 = vmatmul.msk.bf16.gmra.mxu3 %vm623_vm5, %v1735_v18  ;;  %v805_v18 = vand.u32 2147483647, %v2538_v28  ;;  %vm833_vm5 = vmor %vm831_vm3, %vm832_vm2 }
 0x1f5   :  { %v834_v44 = vsel %vm833_vm5, %v2569_v42, %v830_v36  ;;  %v854_v42 = vsel %vm851_vm9, %v853_v52, %v849_v60 }
 0x1f6   :  { %vm806_vm14 = vcmp.eq.f32.partialorder %v805_v18, 8.507059e+37 }
 0x1f7   :  { %v809_v17 = vsel %vm806_vm14, %v808_v10, %v804_v23  ;;  %v2659_v10 = vpop.permute.xlu1 %973 }
 0x258   :  { %v2663_v14 = vpop.permute.xlu1 %1007 }
 0x267   :  { %v2565_v26 = vpop.f32.mrf.mxu3 }
 0x268   :  { %v653_v53 = vadd.f32 %v2565_v26, %v458_v37  ;;  %v770_v37 = vadd.f32 %v2562_v5, %v744_v38 }
 0x26a   :  { %v771_v3 = vadd.f32 %v767_v55, %v653_v53 }
 0x26c   :  { %v856_v21 = vmul.f32 %v809_v17, %v771_v3 }
 0x26e   :  { %v860_v29 = vadd.f32 %v856_v21, %v2420_v63  ;;  %v837_v63 = vand.u32 2147483648, %v2552_v43 }
 0x26f   :  { %v2596_v11 = vpop.f32.mrf.mxu3 }
 0x270   :  { %v654_v1 = vadd.f32 %v2596_v11, %v460_v62  ;;  %v838_v30 = vor.u32 1.1754944e-38, %v837_v63 }
 0x272   :  { %v772_v24 = vadd.f32 %v768_v59, %v654_v1  ;;  %v1049_v59 = vsel %vm721_vm1, %v1038_v9, 0 }
 0x273   :  { %1058 = vmatpush.bf16.msrb.mxu3 %v1049_v59 }
 0x274   :  { %v857_v28 = vmul.f32 %v824_v46, %v772_v24 }
 0x276   :  { %v861_v32 = vadd.f32 %v857_v28, %v2423_v2  ;;  %v835_v2 = vand.u32 2147483647, %v2552_v43 }
 0x277   :  { %v2606_v20 = vpop.f32.mrf.mxu3 }
 0x278   :  { %v873_v34 = vpack.c.bf16 %v861_v32, %v860_v29  ;;  %v655_v35 = vadd.f32 %v2606_v20, %v463_v33  ;;  %vm836_vm8 = vcmp.eq.f32.partialorder %v835_v2, 8.507059e+37 }
 0x279   :  { %v839_v47 = vsel %vm836_vm8, %v838_v30, %v834_v44 }
 0x27a   :  { %1697 = vmatmul.msk.bf16.vlgmr.msrb.gmra.mxu2 %vm714_vm10, %v873_v34  ;;  %v773_v4 = vadd.f32 %v769_v0, %v655_v35  ;;  %v1778_v35 = vld [vmem:[%s2881_s18] ss:$0 sm:$0xff]  ;;  %s2054_s18 = smov 96  }
 0x27c   :  { %v858_v53 = vmul.f32 %v839_v47, %v773_v4 }
 0x27e   :  { %v862_v45 = vadd.f32 %v858_v53, %v2474_v56 }
 0x27f   :  { %v2627_v43 = vpop.f32.mrf.mxu3 }
 0x280   :  { %v656_v51 = vadd.f32 %v2627_v43, %v465_v39 }
 0x282   :  { %v774_v54 = vadd.f32 %v770_v37, %v656_v51 }
 0x284   :  { %v859_v55 = vmul.f32 %v854_v42, %v774_v54 }
 0x286   :  { %v863_v50 = vadd.f32 %v859_v55, %v2477_v22 }
 0x288   :  { %v874_v18 = vpack.c.bf16 %v863_v50, %v862_v45 }
 0x28a   :  { %1698 = vmatmul.msk.bf16.gmra.mxu2 %vm714_vm10, %v874_v18  ;;  %vm961_vm10 = vcmp.lt.s32.totalorder %v2638_v57, 7 }
 0x2fd   :  { %v920_v5 = vpop.f32.mrf.mxu2 }
 0x2fe   :  { %990 = vrot.lane.b32.xlu2 %v920_v5, %s2052_s5  ;;  %945 = vrot.lane.b32.xlu1 %v920_v5, %s2053_s6  ;;  %v930_v22 = vrot.slane %v920_v5, 7 }
 0x305   :  { %v922_v56 = vpop.f32.mrf.mxu2 }
 0x306   :  { %v931_v62 = vrot.slane %v922_v56, 7  ;;  %983 = vperm.xlu2 %1770, %v217_v61   ;;  %947 = vrot.lane.b32.xlu0 %v922_v56, %s2053_s6 }
 0x308   :  { %v939_v7 = vsel %vm936_vm11, %v930_v22, %v931_v62 }
 0x309   :  { %v987_v34 = vmul.f32 %v2659_v10, %v939_v7 }
 0x30d   :  { %v925_v8 = vpop.f32.mrf.mxu2 }
 0x30e   :  { %v932_v13 = vrot.slane %v925_v8, 7  ;;  %992 = vrot.lane.b32.xlu0 %v922_v56, %s2052_s5  ;;  %949 = vrot.lane.b32.xlu1 %v925_v8, %s2053_s6 }
 0x30f   :  { %1774 = vset.pattern.permute.xlu2 %v2051_v6  ;;  %v2661_v6 = vpop.permute.xlu0 %968 }
 0x310   :  { %1015 = vperm.xlu2 %1774, %v216_v25   ;;  %v938_v3 = vsel %vm936_vm11, %v931_v62, %v932_v13 }
 0x315   :  { %v927_v23 = vpop.f32.mrf.mxu2 }
 0x316   :  { %994 = vrot.lane.b32.xlu0 %v925_v8, %s2052_s5  ;;  %978 = vperm.xlu1 %1773, %v216_v25   ;;  %v933_v49 = vrot.slane %v927_v23, 7 }
 0x317   :  { %v2665_v1 = vpop.permute.xlu0 %1011 }
 0x318   :  { %v940_v24 = vsel %vm936_vm11, %v933_v49, %v930_v22  ;;  %v937_v53 = vsel %vm936_vm11, %v932_v13, %v933_v49 }
 0x319   :  { %v986_v27 = vmul.f32 %v2661_v6, %v940_v24 }
 0x31e   :  { %1019 = vperm.xlu0 %1772, %v217_v61   ;;  %951 = vrot.lane.b32.xlu1 %v927_v23, %s2053_s6 }
 0x326   :  { %996 = vrot.lane.b32.xlu1 %v927_v23, %s2052_s5 }
 0x358   :  { %v991_v46 = vpop.permute.xlu2 %990 }
 0x359   :  { %v1002_v33 = vadd.f32 %v991_v46, %v986_v27 }
 0x360   :  { %v2687_v41 = vpop.permute.xlu2 %983 }
 0x361   :  { %v989_v42 = vmul.f32 %v2687_v41, %v937_v53 }
 0x36a   :  { %v2692_v37 = vpop.permute.xlu2 %1015 }
 0x370   :  { %v946_v16 = vpop.permute.xlu1 %945 }
 0x371   :  { %v957_v21 = vrot.slane %v946_v16, 1 }
 0x378   :  { %v948_v17 = vpop.permute.xlu0 %947 }
 0x379   :  { %v958_v19 = vrot.slane %v948_v17, 1 }
 0x37b   :  { %v964_v40 = vsel %vm961_vm10, %v957_v21, %v958_v19 }
 0x37c   :  { %v1022_v28 = vmul.f32 %v2663_v14, %v964_v40 }
 0x37e   :  { %v1026_v36 = vadd.f32 %v1022_v28, %v1002_v33 }
 0x380   :  { %v950_v29 = vpop.permute.xlu1 %949  ;;  %v993_v32 = vpop.permute.xlu0 %992  ;;  %v2681_v58 = vadd.f32 %v1778_v35, %v1026_v36 }
 0x381   :  { %v959_v12 = vrot.slane %v950_v29, 1  ;;  %v1003_v0 = vadd.f32 %v993_v32, %v987_v34  ;;  %v1779_v32 = vld [vmem:[%s2883_s20] ss:$0 sm:$0xff] }
 0x383   :  { %v963_v15 = vsel %vm961_vm10, %v958_v19, %v959_v12 }
 0x384   :  { %v1023_v63 = vmul.f32 %v2665_v1, %v963_v15 }
 0x386   :  { %v1027_v2 = vadd.f32 %v1023_v63, %v1003_v0 }
 0x388   :  { %v2683_v38 = vadd.f32 %v1778_v35, %v1027_v2  ;;  %v2685_v39 = vpop.permute.xlu1 %978  ;;  %v995_v44 = vpop.permute.xlu0 %994 }
 0x389   :  { %v988_v51 = vmul.f32 %v2685_v39, %v938_v3 }
 0x38a   :  { %v1039_v4 = vpack.c.bf16 %v2683_v38, %v2681_v58 }
 0x38b   :  { %v1004_v54 = vadd.f32 %v995_v44, %v988_v51 }
 0x38c   :  { %1699 = vmatmul.msk.bf16.vlgmr.msrb.gmra.mxu3 %vm1041_vm13, %v1039_v4 }
 0x390   :  { %v952_v48 = vpop.permute.xlu1 %951  ;;  %v2703_v55 = vpop.permute.xlu0 %1019 }
 0x391   :  { %v960_v30 = vrot.slane %v952_v48, 1 }
 0x393   :  { %v962_v60 = vsel %vm961_vm10, %v959_v12, %v960_v30  ;;  %v965_v52 = vsel %vm961_vm10, %v960_v30, %v957_v21 }
 0x394   :  { %v1024_v47 = vmul.f32 %v2692_v37, %v962_v60  ;;  %v1025_v18 = vmul.f32 %v2703_v55, %v965_v52 }
 0x396   :  { %v1028_v50 = vadd.f32 %v1024_v47, %v1004_v54  ;;  %v1748_v47 = vld [vmem:[#allocation10] sm:$0xff] }
 0x397   :  { %1241 = vmatpush.bf16.msra.mxu0 %v1748_v47 }
 0x398   :  { %v997_v45 = vpop.permute.xlu1 %996  ;;  %v2708_v22 = vadd.f32 %v1778_v35, %v1028_v50 }
 0x399   :  { %v1005_v5 = vadd.f32 %v997_v45, %v989_v42 }
 0x39b   :  { %v1029_v61 = vadd.f32 %v1025_v18, %v1005_v5 }
 0x39d   :  { %v2706_v56 = vadd.f32 %v1778_v35, %v1029_v61 }
 0x39f   :  { %v1040_v62 = vpack.c.bf16 %v2706_v56, %v2708_v22 }
 0x3a1   :  { %1700 = vmatmul.msk.bf16.gmra.mxu3 %vm1041_vm13, %v1040_v62 }
 0x40f   :  { %v1060_v7 = vpop.f32.mrf.mxu3 }
 0x410   :  { %1082 = vrot.lane.b32.xlu1 %v1060_v7, %s2054_s18  ;;  %v1070_v13 = vrot.slane %v1060_v7, 7 }
 0x417   :  { %v1062_v8 = vpop.f32.mrf.mxu3 }
 0x418   :  { %v1071_v25 = vrot.slane %v1062_v8, 7  ;;  %1106 = vrot.lane.b32.xlu1 %v1060_v7, %s2053_s6  ;;  %1084 = vrot.lane.b32.xlu2 %v1062_v8, %s2054_s18 }
 0x41a   :  { %v1076_v3 = vsel %vm936_vm11, %v1070_v13, %v1071_v25 }
 0x41b   :  { %v1103_v4 = vmul.f32 %v1076_v3, %v2659_v10 }
 0x420   :  { %1108 = vrot.lane.b32.xlu2 %v1062_v8, %s2053_s6 }
 0x424   :  { %v1065_v23 = vpop.f32.mrf.mxu3 }
 0x425   :  { %v1072_v9 = vrot.slane %v1065_v23, 7  ;;  %1110 = vrot.lane.b32.xlu1 %v1065_v23, %s2053_s6  ;;  %1086 = vrot.lane.b32.xlu0 %v1065_v23, %s2054_s18 }
 0x427   :  { %v1075_v59 = vsel %vm936_vm11, %v1071_v25, %v1072_v9 }
 0x428   :  { %v1104_v50 = vmul.f32 %v1075_v59, %v2685_v39 }
 0x42c   :  { %v1067_v16 = vpop.f32.mrf.mxu3 }
 0x42d   :  { %v1073_v17 = vrot.slane %v1067_v16, 7  ;;  %1112 = vrot.lane.b32.xlu2 %v1067_v16, %s2053_s6  ;;  %1088 = vrot.lane.b32.xlu0 %v1067_v16, %s2054_s18 }
 0x42f   :  { %v1074_v49 = vsel %vm936_vm11, %v1072_v9, %v1073_v17  ;;  %v1077_v19 = vsel %vm936_vm11, %v1073_v17, %v1070_v13 }
 0x430   :  { %v1102_v28 = vmul.f32 %v1077_v19, %v2661_v6  ;;  %v1105_v5 = vmul.f32 %v1074_v49, %v2687_v41 }
 0x472   :  { %v1085_v24 = vpop.permute.xlu2 %1084 }
 0x473   :  { %v1095_v46 = vrot.slane %v1085_v24, 1 }
 0x47a   :  { %v1109_v0 = vpop.permute.xlu2 %1108 }
 0x47b   :  { %v1119_v30 = vadd.f32 %v1109_v0, %v1103_v4 }
 0x482   :  { %v1083_v21 = vpop.permute.xlu1 %1082 }
 0x483   :  { %v1094_v40 = vrot.slane %v1083_v21, 1 }
 0x485   :  { %v1100_v27 = vsel %vm961_vm10, %v1094_v40, %v1095_v46 }
 0x486   :  { %v1122_v33 = vmul.f32 %v1100_v27, %v2663_v14 }
 0x487   :  { %v1113_v45 = vpop.permute.xlu2 %1112 }
 0x488   :  { %v1121_v25 = vadd.f32 %v1113_v45, %v1105_v5 }
 0x48a   :  { %v1107_v29 = vpop.permute.xlu1 %1106 }
 0x48b   :  { %v1118_v12 = vadd.f32 %v1107_v29, %v1102_v28 }
 0x48d   :  { %v1126_v34 = vadd.f32 %v1122_v33, %v1118_v12 }
 0x48f   :  { %v2732_v15 = vadd.f32 %v1779_v32, %v1126_v34 }
 0x491   :  { %v1701_v35 = vmul.f32 -1.442695, %v2732_v15 }
 0x493   :  { %1822 = vpow2.f32 %v1701_v35 }
 0x497   :  { %v1087_v36 = vpop.permute.xlu0 %1086  ;;  %v1111_v54 = vpop.permute.xlu1 %1110 }
 0x498   :  { %v1096_v63 = vrot.slane %v1087_v36, 1  ;;  %v1120_v7 = vadd.f32 %v1111_v54, %v1104_v50 }
 0x499   :  { %v1823_v2 = vpop.eup %1822 }
 0x49a   :  { %v1150_v44 = vadd.f32 1.0, %v1823_v2  ;;  %v1099_v48 = vsel %vm961_vm10, %v1095_v46, %v1096_v63 }
 0x49b   :  { %v1123_v51 = vmul.f32 %v1099_v48, %v2665_v1 }
 0x49c   :  { %1824 = vrcp.f32 %v1150_v44  ;;  %vm1159_vm15 = vweird.f32 %v1150_v44  ;;  %v1163_v36 = vand.u32 2147483647, %v1150_v44 }
 0x49d   :  { %v1127_v60 = vadd.f32 %v1123_v51, %v1119_v30 }
 0x49e   :  { %vm1164_vm4 = vcmp.eq.f32.partialorder %v1163_v36, 8.507059e+37 }
 0x49f   :  { %v2739_v52 = vadd.f32 %v1779_v32, %v1127_v60  ;;  %v1089_v53 = vpop.permute.xlu0 %1088 }
 0x4a0   :  { %v1097_v42 = vrot.slane %v1089_v53, 1 }
 0x4a1   :  { %v1702_v18 = vmul.f32 -1.442695, %v2739_v52 }
 0x4a2   :  { %v1098_v61 = vsel %vm961_vm10, %v1096_v63, %v1097_v42  ;;  %v1101_v62 = vsel %vm961_vm10, %v1097_v42, %v1094_v40  ;;  %v1825_v13 = vpop.eup %1824 }
 0x4a3   :  { %1826 = vpow2.f32 %v1702_v18  ;;  %v1124_v8 = vmul.f32 %v1098_v61, %v2692_v37  ;;  %v1125_v3 = vmul.f32 %v1101_v62, %v2703_v55  ;;  %v1155_v59 = vmul.f32 %v1825_v13, %v1150_v44 }
 0x4a4   :  { %vm1160_vm14 = vweird.f32 %v1825_v13 }
 0x4a5   :  { %v1128_v23 = vadd.f32 %v1124_v8, %v1120_v7  ;;  %v1129_v9 = vadd.f32 %v1125_v3, %v1121_v25  ;;  %v1156_v40 = vsub.f32 1.0, %v1155_v59  ;;  %vm1161_vm2 = vmor %vm1159_vm15, %vm1160_vm14 }
 0x4a7   :  { %v2750_v16 = vadd.f32 %v1779_v32, %v1128_v23  ;;  %v2752_v17 = vadd.f32 %v1779_v32, %v1129_v9  ;;  %v1157_v46 = vmul.f32 %v1825_v13, %v1156_v40  ;;  %v1165_v32 = vand.u32 2147483648, %v1150_v44 }
 0x4a9   :  { %v1827_v49 = vpop.eup %1826  ;;  %v1703_v19 = vmul.f32 -1.442695, %v2750_v16  ;;  %v1704_v24 = vmul.f32 -1.442695, %v2752_v17  ;;  %v1158_v33 = vadd.f32 %v1825_v13, %v1157_v46  ;;  %v1166_v30 = vor.u32 1.1754944e-38, %v1165_v32 }
 0x4aa   :  { %v1151_v21 = vadd.f32 1.0, %v1827_v49 }
 0x4ab   :  { %1828 = vpow2.f32 %v1703_v19  ;;  %v1162_v2 = vsel %vm1161_vm2, %v1825_v13, %v1158_v33 }
 0x4ac   :  { %1830 = vrcp.f32 %v1151_v21  ;;  %v1180_v63 = vand.u32 2147483648, %v1151_v21  ;;  %v1178_v48 = vand.u32 2147483647, %v1151_v21  ;;  %vm1174_vm5 = vweird.f32 %v1151_v21 }
 0x4ad   :  { %1832 = vpow2.f32 %v1704_v24  ;;  %v1167_v47 = vsel %vm1164_vm4, %v1166_v30, %v1162_v2 }
 0x4ae   :  { %v1181_v53 = vor.u32 1.1754944e-38, %v1180_v63  ;;  %vm1179_vm7 = vcmp.eq.f32.partialorder %v1178_v48, 8.507059e+37  ;;  %v1214_v50 = vmul.f32 %v1167_v47, %v2732_v15 }
 0x4b1   :  { %v1829_v27 = vpop.eup %1828 }
 0x4b2   :  { %v1831_v28 = vpop.eup %1830  ;;  %v1152_v29 = vadd.f32 1.0, %v1829_v27 }
 0x4b3   :  { %v1833_v12 = vpop.eup %1832  ;;  %v1170_v34 = vmul.f32 %v1831_v28, %v1151_v21  ;;  %vm1175_vm3 = vweird.f32 %v1831_v28 }
 0x4b4   :  { %v1153_v35 = vadd.f32 1.0, %v1833_v12  ;;  %1834 = vrcp.f32 %v1152_v29  ;;  %vm1176_vm6 = vmor %vm1174_vm5, %vm1175_vm3  ;;  %v1193_v62 = vand.u32 2147483647, %v1152_v29  ;;  %v1195_v7 = vand.u32 2147483648, %v1152_v29 }
 0x4b5   :  { %v1171_v0 = vsub.f32 1.0, %v1170_v34  ;;  %vm1189_vm9 = vweird.f32 %v1152_v29 }
 0x4b6   :  { %1836 = vrcp.f32 %v1153_v35  ;;  %v1210_v3 = vand.u32 2147483648, %v1153_v35  ;;  %v1208_v59 = vand.u32 2147483647, %v1153_v35  ;;  %v1196_v15 = vor.u32 1.1754944e-38, %v1195_v7 }
 0x4b7   :  { %v1172_v4 = vmul.f32 %v1831_v28, %v1171_v0  ;;  %vm1194_vm2 = vcmp.eq.f32.partialorder %v1193_v62, 8.507059e+37  ;;  %vm1204_vm3 = vweird.f32 %v1153_v35 }
 0x4b8   :  { %v1211_v21 = vor.u32 1.1754944e-38, %v1210_v3  ;;  %vm1209_vm5 = vcmp.eq.f32.partialorder %v1208_v59, 8.507059e+37 }
 0x4b9   :  { %v1173_v51 = vadd.f32 %v1831_v28, %v1172_v4 }
 0x4ba   :  { %v1835_v60 = vpop.eup %1834 }
 0x4bb   :  { %v1177_v54 = vsel %vm1176_vm6, %v1831_v28, %v1173_v51  ;;  %v1185_v42 = vmul.f32 %v1835_v60, %v1152_v29  ;;  %vm1190_vm8 = vweird.f32 %v1835_v60  ;;  %v2055_v29 = vmov 72  }
 0x4bc   :  { %v1837_v44 = vpop.eup %1836  ;;  %v1182_v45 = vsel %vm1179_vm7, %v1181_v53, %v1177_v54  ;;  %vm1191_vm15 = vmor %vm1189_vm9, %vm1190_vm8  ;;  %1776 = vset.pattern.permute.xlu0 %v2055_v29  ;;  %1775 = vset.pattern.permute.xlu2 %v2055_v29 }
 0x4bd   :  { %v1215_v18 = vmul.f32 %v1182_v45, %v2739_v52  ;;  %v1186_v5 = vsub.f32 1.0, %v1185_v42  ;;  %v1200_v61 = vmul.f32 %v1837_v44, %v1153_v35  ;;  %vm1205_vm14 = vweird.f32 %v1837_v44  ;;  %v1780_v45 = vld [vmem:[%s2885_s22] ss:$0 sm:$0xff] }
 0x4be   :  { %vm1206_vm4 = vmor %vm1204_vm3, %vm1205_vm14 }
 0x4bf   :  { %v1220_v8 = vpack.c.bf16 %v1215_v18, %v1214_v50  ;;  %v1187_v13 = vmul.f32 %v1835_v60, %v1186_v5  ;;  %v1201_v25 = vsub.f32 1.0, %v1200_v61 }
 0x4c1   :  { %1709 = vmatmul.msk.bf16.vlgmr.msra.gmra.mxu0 %vm583_vm12, %v1220_v8  ;;  %v1188_v23 = vadd.f32 %v1835_v60, %v1187_v13  ;;  %v1202_v9 = vmul.f32 %v1837_v44, %v1201_v25 }
 0x4c3   :  { %v1192_v49 = vsel %vm1191_vm15, %v1835_v60, %v1188_v23  ;;  %v1203_v52 = vadd.f32 %v1837_v44, %v1202_v9 }
 0x4c4   :  { %v1197_v19 = vsel %vm1194_vm2, %v1196_v15, %v1192_v49 }
 0x4c5   :  { %v1207_v24 = vsel %vm1206_vm4, %v1837_v44, %v1203_v52  ;;  %v1216_v40 = vmul.f32 %v1197_v19, %v2750_v16  ;;  %vm1564_vm4 = vcmp.eq.s32.totalorder %v2302_v31, 127 }
 0x4c6   :  { %v1212_v46 = vsel %vm1209_vm5, %v1211_v21, %v1207_v24 }
 0x4c7   :  { %v1217_v27 = vmul.f32 %v1212_v46, %v2752_v17 }
 0x4c9   :  { %v1221_v28 = vpack.c.bf16 %v1217_v27, %v1216_v40 }
 0x4d1   :  { %1710 = vmatmul.msk.bf16.gmra.mxu0 %vm583_vm12, %v1221_v28 }
 0x53e   :  { %v1243_v12 = vpop.f32.mrf.mxu0 }
 0x53f   :  { %1265 = vrot.lane.b32.xlu0 %v1243_v12, %s2053_s6  ;;  %v1253_v34 = vrot.slane %v1243_v12, 7 }
 0x546   :  { %v1245_v33 = vpop.f32.mrf.mxu0 }
 0x547   :  { %v1254_v32 = vrot.slane %v1245_v33, 7  ;;  %1289 = vrot.lane.b32.xlu0 %v1243_v12, %s2052_s5  ;;  %1267 = vrot.lane.b32.xlu1 %v1245_v33, %s2053_s6 }
 0x549   :  { %v1259_v16 = vsel %vm936_vm11, %v1253_v34, %v1254_v32 }
 0x54a   :  { %v1286_v61 = vmul.f32 %v1259_v16, %v2659_v10 }
 0x54e   :  { %v1248_v17 = vpop.f32.mrf.mxu0 }
 0x54f   :  { %v1255_v35 = vrot.slane %v1248_v17, 7  ;;  %1328 = vperm.xlu0 %1776, %v2596_v11   ;;  %1291 = vrot.lane.b32.xlu1 %v1245_v33, %s2052_s5 }
 0x550   :  { %1269 = vrot.lane.b32.xlu2 %v1248_v17, %s2053_s6 }
 0x551   :  { %v1258_v36 = vsel %vm936_vm11, %v1254_v32, %v1255_v35 }
 0x552   :  { %v1287_v10 = vmul.f32 %v1258_v36, %v2685_v39 }
 0x556   :  { %v1250_v0 = vpop.f32.mrf.mxu0 }
 0x557   :  { %v1256_v63 = vrot.slane %v1250_v0, 7  ;;  %1338 = vperm.xlu0 %1776, %v2627_v43   ;;  %1271 = vrot.lane.b32.xlu1 %v1250_v0, %s2053_s6  ;;  %v1350_v43 = vld [vmem:[%s2886_s23] sm:$0xf] }
 0x558   :  { %1323 = vperm.xlu2 %1775, %v2565_v26   ;;  %v1360_v4 = vsel %vm721_vm1, %v1350_v43, 0 }
 0x559   :  { %v1260_v2 = vsel %vm936_vm11, %v1256_v63, %v1253_v34  ;;  %v1257_v11 = vsel %vm936_vm11, %v1255_v35, %v1256_v63  ;;  %1369 = vmatpush.bf16.msra.mxu1 %v1360_v4 }
 0x55a   :  { %v1285_v53 = vmul.f32 %v1260_v2, %v2661_v6 }
 0x55f   :  { %1295 = vrot.lane.b32.xlu1 %v1250_v0, %s2052_s5 }
 0x560   :  { %1293 = vrot.lane.b32.xlu2 %v1248_v17, %s2052_s5 }
 0x568   :  { %1333 = vperm.xlu2 %1775, %v2606_v20  }
 0x5aa   :  { %v1270_v48 = vpop.permute.xlu2 %1269 }
 0x5ab   :  { %v1279_v42 = vrot.slane %v1270_v48, 1 }
 0x5b1   :  { %v1266_v26 = vpop.permute.xlu0 %1265 }
 0x5b2   :  { %v1277_v51 = vrot.slane %v1266_v26, 1  ;;  %v1324_v5 = vpop.permute.xlu2 %1323 }
 0x5b9   :  { %v1268_v30 = vpop.permute.xlu1 %1267  ;;  %v1290_v60 = vpop.permute.xlu0 %1289 }
 0x5ba   :  { %v1278_v47 = vrot.slane %v1268_v30, 1  ;;  %v1301_v20 = vadd.f32 %v1290_v60, %v1285_v53  ;;  %v1294_v59 = vpop.permute.xlu2 %1293 }
 0x5bb   :  { %v1303_v21 = vadd.f32 %v1294_v59, %v1287_v10  ;;  %v1750_v59 = vld [vmem:[#allocation13 + $0x8] sm:$0xff] }
 0x5bc   :  { %v1283_v54 = vsel %vm961_vm10, %v1277_v51, %v1278_v47  ;;  %v1282_v50 = vsel %vm961_vm10, %v1278_v47, %v1279_v42  ;;  %1514 = vmatpush.bf16.msra.mxu2 %v1750_v59 }
 0x5bd   :  { %v1305_v44 = vmul.f32 %v1283_v54, %v2663_v14  ;;  %v1306_v8 = vmul.f32 %v1282_v50, %v2665_v1 }
 0x5bf   :  { %v1309_v18 = vadd.f32 %v1305_v44, %v1301_v20 }
 0x5c1   :  { %v1292_v62 = vpop.permute.xlu1 %1291  ;;  %v1317_v6 = vadd.f32 %v1780_v45, %v1309_v18  ;;  %v1329_v14 = vpop.permute.xlu0 %1328 }
 0x5c2   :  { %v1302_v7 = vadd.f32 %v1292_v62, %v1286_v61  ;;  %v1334_v12 = vpop.permute.xlu2 %1333 }
 0x5c3   :  { %v1341_v25 = vmul.f32 %v1324_v5, %v1317_v6 }
 0x5c4   :  { %v1310_v13 = vadd.f32 %v1306_v8, %v1302_v7 }
 0x5c5   :  { %v2798_v15 = vadd.f32 %v1341_v25, %v2681_v58 }
 0x5c6   :  { %v1318_v3 = vadd.f32 %v1780_v45, %v1310_v13 }
 0x5c8   :  { %v1342_v23 = vmul.f32 %v1329_v14, %v1318_v3 }
 0x5c9   :  { %v1272_v9 = vpop.permute.xlu1 %1271  ;;  %v1339_v32 = vpop.permute.xlu0 %1338 }
 0x5ca   :  { %v2801_v49 = vadd.f32 %v1342_v23, %v2683_v38  ;;  %v1280_v52 = vrot.slane %v1272_v9, 1  ;;  %v1288_v38 = vmul.f32 %v1257_v11, %v2687_v41 }
 0x5cc   :  { %v1351_v19 = vpack.c.bf16 %v2801_v49, %v2798_v15  ;;  %v1281_v1 = vsel %vm961_vm10, %v1279_v42, %v1280_v52  ;;  %v1284_v58 = vsel %vm961_vm10, %v1280_v52, %v1277_v51 }
 0x5cd   :  { %v1307_v24 = vmul.f32 %v1281_v1, %v2692_v37  ;;  %v1308_v39 = vmul.f32 %v1284_v58, %v2703_v55  ;;  %v1781_v55 = vld [vmem:[#allocation12] ss:$0 sm:$0xff] }
 0x5ce   :  { %1711 = vmatmul.msk.bf16.vlgmr.msra.gmra.mxu1 %vm1041_vm13, %v1351_v19 }
 0x5cf   :  { %v1311_v40 = vadd.f32 %v1307_v24, %v1303_v21 }
 0x5d1   :  { %v1296_v46 = vpop.permute.xlu1 %1295  ;;  %v1319_v28 = vadd.f32 %v1780_v45, %v1311_v40 }
 0x5d2   :  { %v1304_v27 = vadd.f32 %v1296_v46, %v1288_v38 }
 0x5d3   :  { %v1343_v34 = vmul.f32 %v1334_v12, %v1319_v28 }
 0x5d4   :  { %v1312_v29 = vadd.f32 %v1308_v39, %v1304_v27 }
 0x5d5   :  { %v2815_v37 = vadd.f32 %v1343_v34, %v2708_v22  ;;  %v1749_v34 = vld [vmem:[#allocation13] sm:$0xff] }
 0x5d6   :  { %v1320_v33 = vadd.f32 %v1780_v45, %v1312_v29  ;;  %1515 = vmatpush.bf16.msra.mxu2 %v1749_v34 }
 0x5d8   :  { %v1344_v16 = vmul.f32 %v1339_v32, %v1320_v33 }
 0x5da   :  { %v2818_v17 = vadd.f32 %v1344_v16, %v2706_v56 }
 0x5dc   :  { %v1352_v41 = vpack.c.bf16 %v2818_v17, %v2815_v37 }
 0x5de   :  { %1712 = vmatmul.msk.bf16.gmra.mxu1 %vm1041_vm13, %v1352_v41 }
 0x64b   :  { %v1371_v35 = vpop.f32.mrf.mxu1 }
 0x64c   :  { %v1381_v36 = vmul.f32 2.0, %v1371_v35 }
 0x64e   :  { %v1388_v0 = vsub.f32 %v1781_v55, %v1381_v36 }
 0x650   :  { %v1392_v63 = vsel %vm262_vm0, %v1388_v0, inf }
 0x651   :  { %1393 = vmin.xlane.f32.xlu1 %v1392_v63 }
 0x653   :  { %v1373_v2 = vpop.f32.mrf.mxu1 }
 0x654   :  { %v1382_v11 = vmul.f32 2.0, %v1373_v2 }
 0x656   :  { %v1389_v43 = vsub.f32 %v1781_v55, %v1382_v11 }
 0x658   :  { %v1395_v22 = vsel %vm262_vm0, %v1389_v43, inf }
 0x659   :  { %1396 = vmin.xlane.f32.xlu2 %v1395_v22 }
 0x65b   :  { %v1376_v56 = vpop.f32.mrf.mxu1 }
 0x65c   :  { %v1383_v4 = vmul.f32 2.0, %v1376_v56 }
 0x65e   :  { %v1390_v26 = vsub.f32 %v1781_v55, %v1383_v4 }
 0x660   :  { %v1398_v48 = vsel %vm262_vm0, %v1390_v26, inf }
 0x661   :  { %1399 = vmin.xlane.f32.xlu0 %v1398_v48 }
 0x663   :  { %v1378_v30 = vpop.f32.mrf.mxu1 }
 0x664   :  { %v1384_v51 = vmul.f32 2.0, %v1378_v30 }
 0x666   :  { %v1391_v60 = vsub.f32 %v1781_v55, %v1384_v51 }
 0x668   :  { %v1401_v47 = vsel %vm262_vm0, %v1391_v60, inf }
 0x669   :  { %1402 = vmin.xlane.f32.xlu1 %v1401_v47 }
 0x6c4   :  { %v1394_v53 = vpop.xlane.xlu1 %1393 }
 0x6c5   :  { %vm1404_vm1 = vcmp.le.f32.partialorder %v1388_v0, %v1394_v53 }
 0x6c6   :  { %v1408_v54 = vsel %vm1404_vm1, %v2302_v31, 32 }
 0x6c7   :  { %v1412_v42 = vsel %vm262_vm0, %v1408_v54, 2147483647 }
 0x6c8   :  { %v1414_v20 = vshra.s32 %v1412_v42, 16  ;;  %v1413_v52 = vand.u32 65535, %v1412_v42 }
 0x6ca   :  { %v1416_v44 = vcvt.s32.f32 %v1414_v20  ;;  %v1415_v19 = vcvt.s32.f32 %v1413_v52 }
 0x6cc   :  { %1417 = vmin.xlane.f32.xlu2 %v1416_v44  ;;  %v1397_v45 = vpop.xlane.xlu2 %1396 }
 0x6cd   :  { %vm1405_vm12 = vcmp.le.f32.partialorder %v1389_v43, %v1397_v45  ;;  %v2056_v43 = vmov 0.0  }
 0x6ce   :  { %v1409_v50 = vsel %vm1405_vm12, %v2302_v31, 32 }
 0x6cf   :  { %v1427_v18 = vsel %vm262_vm0, %v1409_v50, 2147483647 }
 0x6d0   :  { %v1429_v5 = vshra.s32 %v1427_v18, 16  ;;  %v1428_v21 = vand.u32 65535, %v1427_v18 }
 0x6d2   :  { %v1431_v61 = vcvt.s32.f32 %v1429_v5  ;;  %v1430_v58 = vcvt.s32.f32 %v1428_v21 }
 0x6d4   :  { %1432 = vmin.xlane.f32.xlu0 %v1431_v61  ;;  %v1400_v62 = vpop.xlane.xlu0 %1399 }
 0x6d5   :  { %vm1406_vm11 = vcmp.le.f32.partialorder %v1390_v26, %v1400_v62 }
 0x6d6   :  { %v1410_v6 = vsel %vm1406_vm11, %v2302_v31, 32 }
 0x6d7   :  { %v1442_v7 = vsel %vm262_vm0, %v1410_v6, 2147483647 }
 0x6d8   :  { %v1444_v8 = vshra.s32 %v1442_v7, 16  ;;  %v1443_v38 = vand.u32 65535, %v1442_v7 }
 0x6da   :  { %v1446_v13 = vcvt.s32.f32 %v1444_v8  ;;  %v1445_v39 = vcvt.s32.f32 %v1443_v38 }
 0x6dc   :  { %1447 = vmin.xlane.f32.xlu1 %v1446_v13  ;;  %v1403_v25 = vpop.xlane.xlu1 %1402 }
 0x6dd   :  { %vm1407_vm10 = vcmp.le.f32.partialorder %v1391_v60, %v1403_v25 }
 0x6de   :  { %v1411_v3 = vsel %vm1407_vm10, %v2302_v31, 32 }
 0x6df   :  { %v1457_v14 = vsel %vm262_vm0, %v1411_v3, 2147483647 }
 0x6e0   :  { %v1459_v23 = vshra.s32 %v1457_v14, 16  ;;  %v1458_v28 = vand.u32 65535, %v1457_v14 }
 0x6e2   :  { %v1461_v9 = vcvt.s32.f32 %v1459_v23  ;;  %v1460_v12 = vcvt.s32.f32 %v1458_v28 }
 0x6e4   :  { %1462 = vmin.xlane.f32.xlu2 %v1461_v9 }
 0x73f   :  { %v1418_v10 = vpop.xlane.xlu2 %1417 }
 0x740   :  { %vm1419_vm6 = vcmp.eq.f32.partialorder %v1416_v44, %v1418_v10  ;;  %v1424_v16 = vcvt.f32.s32 %v1418_v10 }
 0x741   :  { %v1420_v1 = vsel %vm1419_vm6, %v1415_v19, inf }
 0x742   :  { %1421 = vmin.xlane.f32.xlu0 %v1420_v1  ;;  %v1425_v55 = vshll.u32 %v1424_v16, 16 }
 0x747   :  { %v1433_v24 = vpop.xlane.xlu0 %1432 }
 0x748   :  { %vm1434_vm7 = vcmp.eq.f32.partialorder %v1431_v61, %v1433_v24  ;;  %v1439_v35 = vcvt.f32.s32 %v1433_v24 }
 0x749   :  { %v1435_v40 = vsel %vm1434_vm7, %v1430_v58, inf }
 0x74a   :  { %1436 = vmin.xlane.f32.xlu1 %v1435_v40  ;;  %v1440_v63 = vshll.u32 %v1439_v35, 16 }
 0x74f   :  { %v1448_v46 = vpop.xlane.xlu1 %1447 }
 0x750   :  { %vm1449_vm8 = vcmp.eq.f32.partialorder %v1446_v13, %v1448_v46  ;;  %v1454_v48 = vcvt.f32.s32 %v1448_v46 }
 0x751   :  { %v1450_v27 = vsel %vm1449_vm8, %v1445_v39, inf }
 0x752   :  { %1451 = vmin.xlane.f32.xlu2 %v1450_v27  ;;  %v1455_v51 = vshll.u32 %v1454_v48, 16 }
 0x757   :  { %v1463_v29 = vpop.xlane.xlu2 %1462 }
 0x758   :  { %vm1464_vm9 = vcmp.eq.f32.partialorder %v1461_v9, %v1463_v29  ;;  %v1469_v60 = vcvt.f32.s32 %v1463_v29 }
 0x759   :  { %v1465_v33 = vsel %vm1464_vm9, %v1460_v12, inf }
 0x75a   :  { %1466 = vmin.xlane.f32.xlu0 %v1465_v33  ;;  %v1470_v54 = vshll.u32 %v1469_v60, 16 }
 0x7b5   :  { %v1422_v32 = vpop.xlane.xlu0 %1421 }
 0x7b6   :  { %v1423_v41 = vcvt.f32.s32 %v1422_v32 }
 0x7b8   :  { %v1426_v36 = vadd.s32 %v1425_v55, %v1423_v41 }
 0x7ba   :  { %vm1472_vm14 = vcmp.eq.s32.totalorder %v2302_v31, %v1426_v36 }
 0x7bb   :  { %v1713_v22 = vsel %vm1472_vm14, 1.0, %v2056_v43 }
 0x7bd   :  { %v1437_v0 = vpop.xlane.xlu1 %1436 }
 0x7be   :  { %v1438_v2 = vcvt.f32.s32 %v1437_v0 }
 0x7c0   :  { %v1441_v11 = vadd.s32 %v1440_v63, %v1438_v2 }
 0x7c2   :  { %vm1473_vm15 = vcmp.eq.s32.totalorder %v2302_v31, %v1441_v11 }
 0x7c3   :  { %v1714_v56 = vsel %vm1473_vm15, 1.0, %v2056_v43 }
 0x7c4   :  { %v1488_v4 = vpack.c.bf16 %v1714_v56, %v1713_v22 }
 0x7c5   :  { %v1452_v26 = vpop.xlane.xlu2 %1451 }
 0x7c6   :  { %1725 = vmatmul.msk.bf16.vlgmr.msra.gmra.mxu2 %vm262_vm0, %v1488_v4  ;;  %v1453_v30 = vcvt.f32.s32 %v1452_v26 }
 0x7c8   :  { %v1456_v47 = vadd.s32 %v1455_v51, %v1453_v30 }
 0x7ca   :  { %vm1474_vm2 = vcmp.eq.s32.totalorder %v2302_v31, %v1456_v47 }
 0x7cb   :  { %v1715_v44 = vsel %vm1474_vm2, 1.0, %v2056_v43 }
 0x7cd   :  { %v1467_v53 = vpop.xlane.xlu0 %1466 }
 0x7ce   :  { %v1468_v42 = vcvt.f32.s32 %v1467_v53 }
 0x7d0   :  { %v1471_v20 = vadd.s32 %v1470_v54, %v1468_v42 }
 0x7d2   :  { %vm1475_vm3 = vcmp.eq.s32.totalorder %v2302_v31, %v1471_v20 }
 0x7d3   :  { %v1716_v45 = vsel %vm1475_vm3, 1.0, %v2056_v43 }
 0x7d4   :  { %v1489_v50 = vpack.c.bf16 %v1716_v45, %v1715_v44 }
 0x7d6   :  { %1726 = vmatmul.msk.bf16.gmra.mxu2 %vm262_vm0, %v1489_v50  ;;  %vm1560_vm0 = vcmp.eq.s32.totalorder %v2638_v57, 0 }
 0x7d7   :  { %vm1565_vm5 = vmand %vm1560_vm0, %vm1564_vm4 }
 0x849   :  { %v1517_v18 = vpop.f32.mrf.mxu2 }
 0x84a   :  { %v1527_v5 = vsub.f32 %v1517_v18, %v2798_v15 }
 0x84c   :  { %v1531_v61 = vmul.f32 %v1527_v5, %v1527_v5 }
 0x84e   :  { %v1535_v62 = vsel %vm1041_vm13, %v1531_v61, 0.0 }
 0x84f   :  { %1536 = vadd.xlane.f32.xlu1 %v1535_v62 }
 0x851   :  { %v1519_v6 = vpop.f32.mrf.mxu2 }
 0x852   :  { %v1528_v7 = vsub.f32 %v1519_v6, %v2801_v49  ;;  %1578 = vst [vmem:[%s2929_s3 + $0x8] sm:$0xff] %v1519_v6 }
 0x854   :  { %v1532_v8 = vmul.f32 %v1528_v7, %v1528_v7 }
 0x856   :  { %v1538_v13 = vsel %vm1041_vm13, %v1532_v8, 0.0 }
 0x857   :  { %1539 = vadd.xlane.f32.xlu2 %v1538_v13 }
 0x859   :  { %v1522_v25 = vpop.f32.mrf.mxu2 }
 0x85a   :  { %v1529_v3 = vsub.f32 %v1522_v25, %v2815_v37  ;;  %1579 = vst [vmem:[%s2929_s3 + $0x10] sm:$0xff] %v1522_v25 }
 0x85c   :  { %v1533_v15 = vmul.f32 %v1529_v3, %v1529_v3 }
 0x85e   :  { %v1541_v14 = vsel %vm1041_vm13, %v1533_v15, 0.0 }
 0x85f   :  { %1542 = vadd.xlane.f32.xlu0 %v1541_v14 }
 0x861   :  { %v1524_v49 = vpop.f32.mrf.mxu2 }
 0x862   :  { %v1530_v23 = vsub.f32 %v1524_v49, %v2818_v17  ;;  %1580 = vst [vmem:[%s2929_s3 + $0x18] sm:$0xff] %v1524_v49 }
 0x864   :  { %v1534_v9 = vmul.f32 %v1530_v23, %v1530_v23 }
 0x866   :  { %v1544_v59 = vsel %vm1041_vm13, %v1534_v9, 0.0 }
 0x867   :  { %1545 = vadd.xlane.f32.xlu1 %v1544_v59 }
 0x8c2   :  { %v1537_v37 = vpop.xlane.xlu1 %1536 }
 0x8ca   :  { %v1540_v52 = vpop.xlane.xlu2 %1539 }
 0x8cb   :  { %v1547_v19 = vadd.f32 %v1540_v52, %v1537_v37 }
 0x8d2   :  { %v1543_v10 = vpop.xlane.xlu0 %1542 }
 0x8d3   :  { %v1548_v1 = vadd.f32 %v1547_v19, %v1543_v10 }
 0x8da   :  { %v1546_v21 = vpop.xlane.xlu1 %1545 }
 0x8db   :  { %v1549_v24 = vadd.f32 %v1548_v1, %v1546_v21 }
 0x8dd   :  { %v1550_v58 = vrot.slane %v1549_v24, 4 }
 0x8df   :  { %v1551_v40 = vadd.f32 %v1550_v58, %v1549_v24 }
 0x8e1   :  { %v1552_v38 = vrot.slane %v1551_v40, 2 }
 0x8e3   :  { %v1553_v46 = vadd.f32 %v1552_v38, %v1551_v40 }
 0x8e5   :  { %v1554_v17 = vrot.slane %v1553_v46, 1 }
 0x8e7   :  { %v1555_v39 = vadd.f32 %v1554_v17, %v1553_v46 }
 0x8e9   :  { %v1556_v27 = vmul.f32 0.00390625, %v1555_v39 }
 0x8eb   :  { %v1569_v28 = vsel %vm1565_vm5, %v1556_v27, 0.0 }
 0x8ec   :  { %v1573_v29 = vadd.f32 %v1569_v28, %v1517_v18 }
 0x8ee   :  { %1577 = vst [vmem:[%s2929_s3] sm:$0xff] %v1573_v29 }
 0x8ef   :  { %1585 = vsyncpa [#allocation3], 1 }
 0x8f0   :  { %1586 = vsyncpa [#allocation5], 1 }
 0x8f1   :  { %1587 = vsyncpa [#allocation8], 1 }
 0x8f2   :  { %1588 = vsyncpa [#allocation11], 1 }
 0x8f3   :  { %1589 = vsyncpa [#allocation14], 1 }

</bundles_post_ra>
